<compile_context>
chip_gen: v5e
topology: v5e:2x2
jax: 0.10.0
libtpu: 0.0.40
codegen_flags: <defaults>
</compile_context>

<pallas_src>
import functools

import jax
import jax.numpy as jnp
from jax.experimental import pallas as pl
from jax.experimental.pallas import tpu as pltpu


# ----------------------------------------------------------------------------
# Fused kernel: noising -> conv1(+t-bias,ReLU) -> conv2(+t-bias) -> SSE partial
# ----------------------------------------------------------------------------
def _ddpm_fused_kernel(scal_ref, x0_ref, nz_ref, w1_ref, w2_ref, p1_ref, p2_ref,
                       mask_ref, sse_ref, hp_ref, *, c_in, c_mid, q, shift,
                       offsets):
    """One grid step = one sample, fully fused.

    Layout: activations are zero-padded images flattened row-major to
    (channels, Lp) with Lp a multiple of 128.  Each of the 9 conv taps is a
    contiguous lane window of length q = H*(W+2) at a static offset, so the
    3x3 conv becomes 9 small (Cout, Cin) @ (Cin, q) MXU matmuls — the im2col
    "patch" matrix never exists, in VMEM or HBM.
    """
    n = pl.program_id(0)
    sa = scal_ref[n, 0]          # sqrt(alpha_bar[t])
    sb = scal_ref[n, 1]          # sqrt(1 - alpha_bar[t])
    tn = scal_ref[n, 2]          # t / num_ts

    mask = mask_ref[...]         # (1, q): 1.0 on real pixels, 0.0 on wrap cols

    # --- fused forward-diffusion noising (f32). Halo stays zero because both
    #     inputs are zero there, so the zero-padding of the conv is preserved.
    xt = sa * x0_ref[0] + sb * nz_ref[0]                       # (c_in, Lp) f32
    xt_b = xt.astype(jnp.bfloat16)                             # MXU operand

    # --- conv1: 3x3 'same' conv as 9 shifted-window matmuls (bf16 in, f32 acc)
    acc1 = jnp.zeros((c_mid, q), jnp.float32)
    for k, off in enumerate(offsets):
        acc1 = acc1 + jnp.dot(w1_ref[k], xt_b[:, off:off + q],
                              preferred_element_type=jnp.float32)
    # time-conditioned affine epilogue in f32 (p1[0] = conv_bias + fc_bias,
    # precombined in the wrapper; p1[1] = fc_weight).
    h = jnp.maximum(acc1 + p1_ref[0] + tn * p1_ref[1], 0.0)    # (c_mid, q) f32

    # Re-embed h into the padded-flat layout (zero halo) for conv2.
    hp_ref[...] = jnp.zeros_like(hp_ref)
    hp_ref[:, shift:shift + q] = (h * mask).astype(jnp.bfloat16)

    # --- conv2: same structure.
    acc2 = jnp.zeros((c_in, q), jnp.float32)
    for k, off in enumerate(offsets):
        acc2 = acc2 + jnp.dot(w2_ref[k], hp_ref[:, off:off + q],
                              preferred_element_type=jnp.float32)
    pred = acc2 + p2_ref[0] + tn * p2_ref[1]                   # (c_in, q) f32

    # --- fused MSE partial: per-sample sum of squared error vs the true noise.
    nz_i = nz_ref[0, :, shift:shift + q]                       # (c_in, q) f32
    d = (nz_i - pred) * mask
    sse_ref[...] = jnp.zeros_like(sse_ref) + jnp.sum(d * d)


def _fused_loss(x0, noise, scal, params):
    """Runs the fused kernel; returns the scalar diffusion loss."""
    N, C, H, W = x0.shape
    D = params["w1"].shape[-1]

    Wp = W + 2                      # padded width
    Q = H * Wp                      # flattened output window length
    L = (H + 2) * Wp                # flattened padded image length
    # Room for the largest tap offset, rounded to a lane-dense multiple of 128.
    Lp = ((Q + 2 * Wp + 2 + 127) // 128) * 128
    shift = Wp + 1                  # offset of pixel (0, 0) in the padded-flat image
    offsets = tuple(dy * Wp + dx for dy in range(3) for dx in range(3))

    def pad_flat(a):
        n_, c_, h_, w_ = a.shape
        ap = jnp.pad(a, ((0, 0), (0, 0), (1, 1), (1, 1)))
        ap = ap.reshape(n_, c_, (h_ + 2) * (w_ + 2))
        return jnp.pad(ap, ((0, 0), (0, 0), (0, Lp - ap.shape[-1])))

    x0f = pad_flat(x0).astype(jnp.float32)        # (N, C, Lp)
    nzf = pad_flat(noise).astype(jnp.float32)     # (N, C, Lp)

    # Weights (3,3,Cin,Cout) -> per-tap (9, Cout, Cin), bf16 for the MXU.
    w1k = jnp.transpose(params["w1"], (0, 1, 3, 2)).reshape(9, D, C).astype(jnp.bfloat16)
    w2k = jnp.transpose(params["w2"], (0, 1, 3, 2)).reshape(9, C, D).astype(jnp.bfloat16)

    # Per-channel affine params: row 0 = conv_bias + fc_bias (precombined),
    # row 1 = fc_weight.  Stored as columns so they broadcast over (Cout, Q).
    p1 = jnp.stack([params["b1"] + params["fcb1"],
                    params["fcw1"]]).reshape(2, D, 1).astype(jnp.float32)
    p2 = jnp.stack([params["b2"] + params["fcb2"],
                    params["fcw2"]]).reshape(2, C, 1).astype(jnp.float32)

    # Validity mask: the flattened output grid has 2 wrap columns per row.
    col = jnp.arange(Q, dtype=jnp.int32) % Wp
    mask = (col < W).astype(jnp.float32).reshape(1, Q)

    kernel = functools.partial(_ddpm_fused_kernel, c_in=C, c_mid=D, q=Q,
                               shift=shift, offsets=offsets)

    sse = pl.pallas_call(
        kernel,
        out_shape=jax.ShapeDtypeStruct((N, 8, 128), jnp.float32),
        grid=(N,),
        in_specs=[
            pl.BlockSpec(memory_space=pltpu.SMEM),              # scal (N, 3)
            pl.BlockSpec((1, C, Lp), lambda n: (n, 0, 0)),      # x0 (padded-flat)
            pl.BlockSpec((1, C, Lp), lambda n: (n, 0, 0)),      # noise (padded-flat)
            pl.BlockSpec((9, D, C), lambda n: (0, 0, 0)),       # conv1 weights
            pl.BlockSpec((9, C, D), lambda n: (0, 0, 0)),       # conv2 weights
            pl.BlockSpec((2, D, 1), lambda n: (0, 0, 0)),       # conv1 affine params
            pl.BlockSpec((2, C, 1), lambda n: (0, 0, 0)),       # conv2 affine params
            pl.BlockSpec((1, Q), lambda n: (0, 0)),             # validity mask
        ],
        out_specs=pl.BlockSpec((1, 8, 128), lambda n: (n, 0, 0)),
        scratch_shapes=[pltpu.VMEM((D, Lp), jnp.bfloat16)],     # padded h
        compiler_params=pltpu.CompilerParams(
            dimension_semantics=("parallel",)),
    )(scal, x0f, nzf, w1k, w2k, p1, p2, mask)

    # Finalize with the TRUE global element count (tiling-safe normalization).
    return jnp.sum(sse[:, 0, 0]) / (N * C * H * W)


# ----------------------------------------------------------------------------
# DDPM forward (Algorithm 1)
# ----------------------------------------------------------------------------
def _sample_noise_and_scalars(rng, shape, num_ts, betas):
    """Matches DDPM.get_schedule + the t / noise draws of DDPM.forward."""
    N = shape[0]
    beta = jnp.linspace(betas[0], betas[1], num_ts, dtype=jnp.float32)
    alpha_bar = jnp.cumprod(1.0 - beta)
    k_t, k_n = jax.random.split(rng)
    t = jax.random.randint(k_t, (N,), 0, num_ts)
    noise = jax.random.normal(k_n, shape, jnp.float32)
    ab = alpha_bar[t]
    scal = jnp.stack([jnp.sqrt(ab), jnp.sqrt(1.0 - ab),
                      t.astype(jnp.float32) / num_ts], axis=1)   # (N, 3)
    return noise, scal


@functools.partial(jax.jit, static_argnames=("num_ts", "betas"))
def ddpm_forward(x0_nchw, params, rng, *, num_ts=300, betas=(1e-4, 0.02)):
    noise, scal = _sample_noise_and_scalars(rng, x0_nchw.shape, num_ts, betas)
    return _fused_loss(x0_nchw, noise, scal, params)


# ----------------------------------------------------------------------------
# Pure-JAX reference of the same stand-in model (for a numerical sanity check)
# ----------------------------------------------------------------------------
def _reference_loss(x0, noise, scal, params):
    N, C, H, W = x0.shape
    sa = scal[:, 0].reshape(N, 1, 1, 1)
    sb = scal[:, 1].reshape(N, 1, 1, 1)
    t = scal[:, 2]
    xt = sa * x0 + sb * noise

    def conv3(x, w, b, fcw, fcb, relu):
        n_, ci, h_, w_ = x.shape
        co = w.shape[-1]
        xp = jnp.pad(x, ((0, 0), (0, 0), (1, 1), (1, 1)))
        out = jnp.zeros((n_, co, h_, w_), jnp.float32)
        for dy in range(3):
            for dx in range(3):
                patch = xp[:, :, dy:dy + h_, dx:dx + w_]
                patch = patch.astype(jnp.bfloat16).astype(jnp.float32)
                wk = w[dy, dx].astype(jnp.bfloat16).astype(jnp.float32)  # (Cin, Cout)
                out = out + jnp.einsum("nchw,ck->nkhw", patch, wk,
                                       precision=jax.lax.Precision.HIGHEST)
        bias = (b + fcb)[None, :] + t[:, None] * fcw[None, :]           # (N, Cout)
        out = out + bias[:, :, None, None]
        return jnp.maximum(out, 0.0) if relu else out

    h = conv3(xt, params["w1"], params["b1"], params["fcw1"], params["fcb1"], True)
    pred = conv3(h, params["w2"], params["b2"], params["fcw2"], params["fcb2"], False)
    return jnp.mean((noise - pred) ** 2)


if __name__ == "__main__":
    N, C, H, W = 2, 4, 16, 16
    D = 32          # hidden channels of the synthetic unet stand-in
    num_ts = 300

    key = jax.random.PRNGKey(0)
    (k_x, k_rng, k_w1, k_w2, k_b1, k_b2,
     k_f1, k_f2, k_g1, k_g2) = jax.random.split(key, 10)

    x0 = jax.random.normal(k_x, (N, C, H, W), jnp.float32)

    params = {
        "w1": 0.1 * jax.random.normal(k_w1, (3, 3, C, D), jnp.float32),
        "b1": 0.05 * jax.random.normal(k_b1, (D,), jnp.float32),
        "fcw1": 0.1 * jax.random.normal(k_f1, (D,), jnp.float32),
        "fcb1": 0.05 * jax.random.normal(k_g1, (D,), jnp.float32),
        "w2": 0.1 * jax.random.normal(k_w2, (3, 3, D, C), jnp.float32),
        "b2": 0.05 * jax.random.normal(k_b2, (C,), jnp.float32),
        "fcw2": 0.1 * jax.random.normal(k_f2, (C,), jnp.float32),
        "fcb2": 0.05 * jax.random.normal(k_g2, (C,), jnp.float32),
    }

    loss = ddpm_forward(x0, params, k_rng, num_ts=num_ts)
    jax.block_until_ready(loss)

    # Numerical sanity check against a pure-JAX reference of the same model.
    noise, scal = _sample_noise_and_scalars(k_rng, x0.shape, num_ts, (1e-4, 0.02))
    ref = _reference_loss(x0, noise, scal, params)

    assert loss.shape == () and bool(jnp.isfinite(loss))
    assert jnp.allclose(loss, ref, rtol=2e-2, atol=2e-2), (float(loss), float(ref))
    print("KERNEL_OK")
</pallas_src>

<mosaic_0001>
module attributes {stable_mosaic.version = 11 : i64} {
  func.func @_ddpm_fused_kernel(%arg0: i32, %arg1: memref<2x3xf32, #tpu.memory_space<smem>>, %arg2: memref<1x4x384xf32, #tpu.memory_space<vmem>>, %arg3: memref<1x4x384xf32, #tpu.memory_space<vmem>>, %arg4: memref<9x32x4xbf16, #tpu.memory_space<vmem>>, %arg5: memref<9x4x32xbf16, #tpu.memory_space<vmem>>, %arg6: memref<2x32x1xf32, #tpu.memory_space<vmem>>, %arg7: memref<2x4x1xf32, #tpu.memory_space<vmem>>, %arg8: memref<1x288xf32, #tpu.memory_space<vmem>>, %arg9: memref<1x8x128xf32, #tpu.memory_space<vmem>>, %arg10: memref<32x384xbf16, #tpu.memory_space<vmem>>) attributes {dimension_semantics = [#tpu.dimension_semantics<parallel>], iteration_bounds = array<i64: 2>, scalar_prefetch = 0 : i64, scratch_operands = 1 : i64, tpu.core_type = #tpu.core_type<tc>, window_params = [{transform_indices = @transform_0, window_bounds = array<i64: 2, 3>}, {transform_indices = @transform_1, window_bounds = array<i64: 1, 4, 384>}, {transform_indices = @transform_2, window_bounds = array<i64: 1, 4, 384>}, {pipeline_mode = #tpu.pipeline_mode<synchronous>, transform_indices = @transform_3, window_bounds = array<i64: 9, 32, 4>}, {pipeline_mode = #tpu.pipeline_mode<synchronous>, transform_indices = @transform_4, window_bounds = array<i64: 9, 4, 32>}, {pipeline_mode = #tpu.pipeline_mode<synchronous>, transform_indices = @transform_5, window_bounds = array<i64: 2, 32, 1>}, {pipeline_mode = #tpu.pipeline_mode<synchronous>, transform_indices = @transform_6, window_bounds = array<i64: 2, 4, 1>}, {pipeline_mode = #tpu.pipeline_mode<synchronous>, transform_indices = @transform_7, window_bounds = array<i64: 1, 288>}, {transform_indices = @transform_8, window_bounds = array<i64: 1, 8, 128>}]} {
    %0 = arith.index_cast %arg0 : i32 to index
    %c0 = arith.constant 0 : index
    %1 = memref.load %arg1[%0, %c0] : memref<2x3xf32, #tpu.memory_space<smem>>
    %2 = arith.index_cast %arg0 : i32 to index
    %c1 = arith.constant 1 : index
    %3 = memref.load %arg1[%2, %c1] : memref<2x3xf32, #tpu.memory_space<smem>>
    %4 = arith.index_cast %arg0 : i32 to index
    %c2 = arith.constant 2 : index
    %5 = memref.load %arg1[%4, %c2] : memref<2x3xf32, #tpu.memory_space<smem>>
    %c0_0 = arith.constant 0 : index
    %c0_1 = arith.constant 0 : index
    %6 = vector.load %arg8[%c0_0, %c0_1] : memref<1x288xf32, #tpu.memory_space<vmem>>, vector<1x288xf32>
    %c0_2 = arith.constant 0 : index
    %c0_3 = arith.constant 0 : index
    %c0_4 = arith.constant 0 : index
    %7 = vector.load %arg2[%c0_2, %c0_3, %c0_4] : memref<1x4x384xf32, #tpu.memory_space<vmem>>, vector<1x4x384xf32>
    %8 = vector.shape_cast %7 : vector<1x4x384xf32> to vector<4x384xf32>
    %9 = vector.broadcast %1 : f32 to vector<4x384xf32>
    %10 = arith.mulf %9, %8 : vector<4x384xf32>
    %c0_5 = arith.constant 0 : index
    %c0_6 = arith.constant 0 : index
    %c0_7 = arith.constant 0 : index
    %11 = vector.load %arg3[%c0_5, %c0_6, %c0_7] : memref<1x4x384xf32, #tpu.memory_space<vmem>>, vector<1x4x384xf32>
    %12 = vector.shape_cast %11 : vector<1x4x384xf32> to vector<4x384xf32>
    %13 = vector.broadcast %3 : f32 to vector<4x384xf32>
    %14 = arith.mulf %13, %12 : vector<4x384xf32>
    %15 = arith.addf %10, %14 : vector<4x384xf32>
    %16 = arith.truncf %15 : vector<4x384xf32> to vector<4x384xbf16>
    %cst = arith.constant 0.000000e+00 : f32
    %17 = vector.broadcast %cst : f32 to vector<32x288xf32>
    %c0_8 = arith.constant 0 : index
    %c0_9 = arith.constant 0 : index
    %c0_10 = arith.constant 0 : index
    %18 = vector.load %arg4[%c0_8, %c0_9, %c0_10] : memref<9x32x4xbf16, #tpu.memory_space<vmem>>, vector<1x32x4xbf16>
    %19 = vector.shape_cast %18 : vector<1x32x4xbf16> to vector<32x4xbf16>
    %20 = vector.extract_strided_slice %16 {offsets = [0, 0], sizes = [4, 288], strides = [1, 1]} : vector<4x384xbf16> to vector<4x288xbf16>
    %cst_11 = arith.constant dense<0.000000e+00> : vector<32x288xf32>
    %21 = tpu.matmul %19, %20, %cst_11 {dimension_numbers = #tpu.dot_dimension_numbers<[1], [0], [0], [1], [0, 0, 1, 1], [], []>} : vector<32x4xbf16>, vector<4x288xbf16>, vector<32x288xf32> -> vector<32x288xf32>
    %22 = arith.addf %17, %21 : vector<32x288xf32>
    %c1_12 = arith.constant 1 : index
    %c0_13 = arith.constant 0 : index
    %c0_14 = arith.constant 0 : index
    %23 = vector.load %arg4[%c1_12, %c0_13, %c0_14] : memref<9x32x4xbf16, #tpu.memory_space<vmem>>, vector<1x32x4xbf16>
    %24 = vector.shape_cast %23 : vector<1x32x4xbf16> to vector<32x4xbf16>
    %25 = vector.extract_strided_slice %16 {offsets = [0, 1], sizes = [4, 288], strides = [1, 1]} : vector<4x384xbf16> to vector<4x288xbf16>
    %cst_15 = arith.constant dense<0.000000e+00> : vector<32x288xf32>
    %26 = tpu.matmul %24, %25, %cst_15 {dimension_numbers = #tpu.dot_dimension_numbers<[1], [0], [0], [1], [0, 0, 1, 1], [], []>} : vector<32x4xbf16>, vector<4x288xbf16>, vector<32x288xf32> -> vector<32x288xf32>
    %27 = arith.addf %22, %26 : vector<32x288xf32>
    %c2_16 = arith.constant 2 : index
    %c0_17 = arith.constant 0 : index
    %c0_18 = arith.constant 0 : index
    %28 = vector.load %arg4[%c2_16, %c0_17, %c0_18] : memref<9x32x4xbf16, #tpu.memory_space<vmem>>, vector<1x32x4xbf16>
    %29 = vector.shape_cast %28 : vector<1x32x4xbf16> to vector<32x4xbf16>
    %30 = vector.extract_strided_slice %16 {offsets = [0, 2], sizes = [4, 288], strides = [1, 1]} : vector<4x384xbf16> to vector<4x288xbf16>
    %cst_19 = arith.constant dense<0.000000e+00> : vector<32x288xf32>
    %31 = tpu.matmul %29, %30, %cst_19 {dimension_numbers = #tpu.dot_dimension_numbers<[1], [0], [0], [1], [0, 0, 1, 1], [], []>} : vector<32x4xbf16>, vector<4x288xbf16>, vector<32x288xf32> -> vector<32x288xf32>
    %32 = arith.addf %27, %31 : vector<32x288xf32>
    %c3 = arith.constant 3 : index
    %c0_20 = arith.constant 0 : index
    %c0_21 = arith.constant 0 : index
    %33 = vector.load %arg4[%c3, %c0_20, %c0_21] : memref<9x32x4xbf16, #tpu.memory_space<vmem>>, vector<1x32x4xbf16>
    %34 = vector.shape_cast %33 : vector<1x32x4xbf16> to vector<32x4xbf16>
    %35 = vector.extract_strided_slice %16 {offsets = [0, 18], sizes = [4, 288], strides = [1, 1]} : vector<4x384xbf16> to vector<4x288xbf16>
    %cst_22 = arith.constant dense<0.000000e+00> : vector<32x288xf32>
    %36 = tpu.matmul %34, %35, %cst_22 {dimension_numbers = #tpu.dot_dimension_numbers<[1], [0], [0], [1], [0, 0, 1, 1], [], []>} : vector<32x4xbf16>, vector<4x288xbf16>, vector<32x288xf32> -> vector<32x288xf32>
    %37 = arith.addf %32, %36 : vector<32x288xf32>
    %c4 = arith.constant 4 : index
    %c0_23 = arith.constant 0 : index
    %c0_24 = arith.constant 0 : index
    %38 = vector.load %arg4[%c4, %c0_23, %c0_24] : memref<9x32x4xbf16, #tpu.memory_space<vmem>>, vector<1x32x4xbf16>
    %39 = vector.shape_cast %38 : vector<1x32x4xbf16> to vector<32x4xbf16>
    %40 = vector.extract_strided_slice %16 {offsets = [0, 19], sizes = [4, 288], strides = [1, 1]} : vector<4x384xbf16> to vector<4x288xbf16>
    %cst_25 = arith.constant dense<0.000000e+00> : vector<32x288xf32>
    %41 = tpu.matmul %39, %40, %cst_25 {dimension_numbers = #tpu.dot_dimension_numbers<[1], [0], [0], [1], [0, 0, 1, 1], [], []>} : vector<32x4xbf16>, vector<4x288xbf16>, vector<32x288xf32> -> vector<32x288xf32>
    %42 = arith.addf %37, %41 : vector<32x288xf32>
    %c5 = arith.constant 5 : index
    %c0_26 = arith.constant 0 : index
    %c0_27 = arith.constant 0 : index
    %43 = vector.load %arg4[%c5, %c0_26, %c0_27] : memref<9x32x4xbf16, #tpu.memory_space<vmem>>, vector<1x32x4xbf16>
    %44 = vector.shape_cast %43 : vector<1x32x4xbf16> to vector<32x4xbf16>
    %45 = vector.extract_strided_slice %16 {offsets = [0, 20], sizes = [4, 288], strides = [1, 1]} : vector<4x384xbf16> to vector<4x288xbf16>
    %cst_28 = arith.constant dense<0.000000e+00> : vector<32x288xf32>
    %46 = tpu.matmul %44, %45, %cst_28 {dimension_numbers = #tpu.dot_dimension_numbers<[1], [0], [0], [1], [0, 0, 1, 1], [], []>} : vector<32x4xbf16>, vector<4x288xbf16>, vector<32x288xf32> -> vector<32x288xf32>
    %47 = arith.addf %42, %46 : vector<32x288xf32>
    %c6 = arith.constant 6 : index
    %c0_29 = arith.constant 0 : index
    %c0_30 = arith.constant 0 : index
    %48 = vector.load %arg4[%c6, %c0_29, %c0_30] : memref<9x32x4xbf16, #tpu.memory_space<vmem>>, vector<1x32x4xbf16>
    %49 = vector.shape_cast %48 : vector<1x32x4xbf16> to vector<32x4xbf16>
    %50 = vector.extract_strided_slice %16 {offsets = [0, 36], sizes = [4, 288], strides = [1, 1]} : vector<4x384xbf16> to vector<4x288xbf16>
    %cst_31 = arith.constant dense<0.000000e+00> : vector<32x288xf32>
    %51 = tpu.matmul %49, %50, %cst_31 {dimension_numbers = #tpu.dot_dimension_numbers<[1], [0], [0], [1], [0, 0, 1, 1], [], []>} : vector<32x4xbf16>, vector<4x288xbf16>, vector<32x288xf32> -> vector<32x288xf32>
    %52 = arith.addf %47, %51 : vector<32x288xf32>
    %c7 = arith.constant 7 : index
    %c0_32 = arith.constant 0 : index
    %c0_33 = arith.constant 0 : index
    %53 = vector.load %arg4[%c7, %c0_32, %c0_33] : memref<9x32x4xbf16, #tpu.memory_space<vmem>>, vector<1x32x4xbf16>
    %54 = vector.shape_cast %53 : vector<1x32x4xbf16> to vector<32x4xbf16>
    %55 = vector.extract_strided_slice %16 {offsets = [0, 37], sizes = [4, 288], strides = [1, 1]} : vector<4x384xbf16> to vector<4x288xbf16>
    %cst_34 = arith.constant dense<0.000000e+00> : vector<32x288xf32>
    %56 = tpu.matmul %54, %55, %cst_34 {dimension_numbers = #tpu.dot_dimension_numbers<[1], [0], [0], [1], [0, 0, 1, 1], [], []>} : vector<32x4xbf16>, vector<4x288xbf16>, vector<32x288xf32> -> vector<32x288xf32>
    %57 = arith.addf %52, %56 : vector<32x288xf32>
    %c8 = arith.constant 8 : index
    %c0_35 = arith.constant 0 : index
    %c0_36 = arith.constant 0 : index
    %58 = vector.load %arg4[%c8, %c0_35, %c0_36] : memref<9x32x4xbf16, #tpu.memory_space<vmem>>, vector<1x32x4xbf16>
    %59 = vector.shape_cast %58 : vector<1x32x4xbf16> to vector<32x4xbf16>
    %60 = vector.extract_strided_slice %16 {offsets = [0, 38], sizes = [4, 288], strides = [1, 1]} : vector<4x384xbf16> to vector<4x288xbf16>
    %cst_37 = arith.constant dense<0.000000e+00> : vector<32x288xf32>
    %61 = tpu.matmul %59, %60, %cst_37 {dimension_numbers = #tpu.dot_dimension_numbers<[1], [0], [0], [1], [0, 0, 1, 1], [], []>} : vector<32x4xbf16>, vector<4x288xbf16>, vector<32x288xf32> -> vector<32x288xf32>
    %62 = arith.addf %57, %61 : vector<32x288xf32>
    %c0_38 = arith.constant 0 : index
    %c0_39 = arith.constant 0 : index
    %c0_40 = arith.constant 0 : index
    %63 = vector.load %arg6[%c0_38, %c0_39, %c0_40] : memref<2x32x1xf32, #tpu.memory_space<vmem>>, vector<1x32x1xf32>
    %64 = vector.shape_cast %63 : vector<1x32x1xf32> to vector<32x1xf32>
    %65 = vector.broadcast %64 : vector<32x1xf32> to vector<32x288xf32>
    %66 = arith.addf %62, %65 : vector<32x288xf32>
    %c1_41 = arith.constant 1 : index
    %c0_42 = arith.constant 0 : index
    %c0_43 = arith.constant 0 : index
    %67 = vector.load %arg6[%c1_41, %c0_42, %c0_43] : memref<2x32x1xf32, #tpu.memory_space<vmem>>, vector<1x32x1xf32>
    %68 = vector.shape_cast %67 : vector<1x32x1xf32> to vector<32x1xf32>
    %69 = vector.broadcast %5 : f32 to vector<32x1xf32>
    %70 = arith.mulf %69, %68 : vector<32x1xf32>
    %71 = vector.broadcast %70 : vector<32x1xf32> to vector<32x288xf32>
    %72 = arith.addf %66, %71 : vector<32x288xf32>
    %cst_44 = arith.constant 0.000000e+00 : f32
    %73 = vector.broadcast %cst_44 : f32 to vector<32x288xf32>
    %74 = arith.maximumf %72, %73 : vector<32x288xf32>
    %cst_45 = arith.constant 0.000000e+00 : bf16
    %75 = vector.broadcast %cst_45 : bf16 to vector<32x384xbf16>
    %c0_46 = arith.constant 0 : index
    %c0_47 = arith.constant 0 : index
    %76 = vector.load %arg10[%c0_46, %c0_47] : memref<32x384xbf16, #tpu.memory_space<vmem>>, vector<32x384xbf16>
    tpu.vector_store %arg10[%c0_46, %c0_47], %75 {strides = array<i32>} : memref<32x384xbf16, #tpu.memory_space<vmem>>, vector<32x384xbf16>,
    %77 = vector.broadcast %6 : vector<1x288xf32> to vector<32x288xf32>
    %78 = arith.mulf %74, %77 : vector<32x288xf32>
    %79 = arith.truncf %78 : vector<32x288xf32> to vector<32x288xbf16>
    %c0_48 = arith.constant 0 : index
    %c19 = arith.constant 19 : index
    %80 = vector.load %arg10[%c0_48, %c19] : memref<32x384xbf16, #tpu.memory_space<vmem>>, vector<32x288xbf16>
    tpu.vector_store %arg10[%c0_48, %c19], %79 {strides = array<i32>} : memref<32x384xbf16, #tpu.memory_space<vmem>>, vector<32x288xbf16>,
    %cst_49 = arith.constant 0.000000e+00 : f32
    %81 = vector.broadcast %cst_49 : f32 to vector<4x288xf32>
    %c0_50 = arith.constant 0 : index
    %c0_51 = arith.constant 0 : index
    %c0_52 = arith.constant 0 : index
    %82 = vector.load %arg5[%c0_50, %c0_51, %c0_52] : memref<9x4x32xbf16, #tpu.memory_space<vmem>>, vector<1x4x32xbf16>
    %83 = vector.shape_cast %82 : vector<1x4x32xbf16> to vector<4x32xbf16>
    %c0_53 = arith.constant 0 : index
    %c0_54 = arith.constant 0 : index
    %84 = vector.load %arg10[%c0_53, %c0_54] : memref<32x384xbf16, #tpu.memory_space<vmem>>, vector<32x288xbf16>
    %cst_55 = arith.constant dense<0.000000e+00> : vector<4x288xf32>
    %85 = tpu.matmul %83, %84, %cst_55 {dimension_numbers = #tpu.dot_dimension_numbers<[1], [0], [0], [1], [0, 0, 1, 1], [], []>} : vector<4x32xbf16>, vector<32x288xbf16>, vector<4x288xf32> -> vector<4x288xf32>
    %86 = arith.addf %81, %85 : vector<4x288xf32>
    %c1_56 = arith.constant 1 : index
    %c0_57 = arith.constant 0 : index
    %c0_58 = arith.constant 0 : index
    %87 = vector.load %arg5[%c1_56, %c0_57, %c0_58] : memref<9x4x32xbf16, #tpu.memory_space<vmem>>, vector<1x4x32xbf16>
    %88 = vector.shape_cast %87 : vector<1x4x32xbf16> to vector<4x32xbf16>
    %c0_59 = arith.constant 0 : index
    %c1_60 = arith.constant 1 : index
    %89 = vector.load %arg10[%c0_59, %c1_60] : memref<32x384xbf16, #tpu.memory_space<vmem>>, vector<32x288xbf16>
    %cst_61 = arith.constant dense<0.000000e+00> : vector<4x288xf32>
    %90 = tpu.matmul %88, %89, %cst_61 {dimension_numbers = #tpu.dot_dimension_numbers<[1], [0], [0], [1], [0, 0, 1, 1], [], []>} : vector<4x32xbf16>, vector<32x288xbf16>, vector<4x288xf32> -> vector<4x288xf32>
    %91 = arith.addf %86, %90 : vector<4x288xf32>
    %c2_62 = arith.constant 2 : index
    %c0_63 = arith.constant 0 : index
    %c0_64 = arith.constant 0 : index
    %92 = vector.load %arg5[%c2_62, %c0_63, %c0_64] : memref<9x4x32xbf16, #tpu.memory_space<vmem>>, vector<1x4x32xbf16>
    %93 = vector.shape_cast %92 : vector<1x4x32xbf16> to vector<4x32xbf16>
    %c0_65 = arith.constant 0 : index
    %c2_66 = arith.constant 2 : index
    %94 = vector.load %arg10[%c0_65, %c2_66] : memref<32x384xbf16, #tpu.memory_space<vmem>>, vector<32x288xbf16>
    %cst_67 = arith.constant dense<0.000000e+00> : vector<4x288xf32>
    %95 = tpu.matmul %93, %94, %cst_67 {dimension_numbers = #tpu.dot_dimension_numbers<[1], [0], [0], [1], [0, 0, 1, 1], [], []>} : vector<4x32xbf16>, vector<32x288xbf16>, vector<4x288xf32> -> vector<4x288xf32>
    %96 = arith.addf %91, %95 : vector<4x288xf32>
    %c3_68 = arith.constant 3 : index
    %c0_69 = arith.constant 0 : index
    %c0_70 = arith.constant 0 : index
    %97 = vector.load %arg5[%c3_68, %c0_69, %c0_70] : memref<9x4x32xbf16, #tpu.memory_space<vmem>>, vector<1x4x32xbf16>
    %98 = vector.shape_cast %97 : vector<1x4x32xbf16> to vector<4x32xbf16>
    %c0_71 = arith.constant 0 : index
    %c18 = arith.constant 18 : index
    %99 = vector.load %arg10[%c0_71, %c18] : memref<32x384xbf16, #tpu.memory_space<vmem>>, vector<32x288xbf16>
    %cst_72 = arith.constant dense<0.000000e+00> : vector<4x288xf32>
    %100 = tpu.matmul %98, %99, %cst_72 {dimension_numbers = #tpu.dot_dimension_numbers<[1], [0], [0], [1], [0, 0, 1, 1], [], []>} : vector<4x32xbf16>, vector<32x288xbf16>, vector<4x288xf32> -> vector<4x288xf32>
    %101 = arith.addf %96, %100 : vector<4x288xf32>
    %c4_73 = arith.constant 4 : index
    %c0_74 = arith.constant 0 : index
    %c0_75 = arith.constant 0 : index
    %102 = vector.load %arg5[%c4_73, %c0_74, %c0_75] : memref<9x4x32xbf16, #tpu.memory_space<vmem>>, vector<1x4x32xbf16>
    %103 = vector.shape_cast %102 : vector<1x4x32xbf16> to vector<4x32xbf16>
    %c0_76 = arith.constant 0 : index
    %c19_77 = arith.constant 19 : index
    %104 = vector.load %arg10[%c0_76, %c19_77] : memref<32x384xbf16, #tpu.memory_space<vmem>>, vector<32x288xbf16>
    %cst_78 = arith.constant dense<0.000000e+00> : vector<4x288xf32>
    %105 = tpu.matmul %103, %104, %cst_78 {dimension_numbers = #tpu.dot_dimension_numbers<[1], [0], [0], [1], [0, 0, 1, 1], [], []>} : vector<4x32xbf16>, vector<32x288xbf16>, vector<4x288xf32> -> vector<4x288xf32>
    %106 = arith.addf %101, %105 : vector<4x288xf32>
    %c5_79 = arith.constant 5 : index
    %c0_80 = arith.constant 0 : index
    %c0_81 = arith.constant 0 : index
    %107 = vector.load %arg5[%c5_79, %c0_80, %c0_81] : memref<9x4x32xbf16, #tpu.memory_space<vmem>>, vector<1x4x32xbf16>
    %108 = vector.shape_cast %107 : vector<1x4x32xbf16> to vector<4x32xbf16>
    %c0_82 = arith.constant 0 : index
    %c20 = arith.constant 20 : index
    %109 = vector.load %arg10[%c0_82, %c20] : memref<32x384xbf16, #tpu.memory_space<vmem>>, vector<32x288xbf16>
    %cst_83 = arith.constant dense<0.000000e+00> : vector<4x288xf32>
    %110 = tpu.matmul %108, %109, %cst_83 {dimension_numbers = #tpu.dot_dimension_numbers<[1], [0], [0], [1], [0, 0, 1, 1], [], []>} : vector<4x32xbf16>, vector<32x288xbf16>, vector<4x288xf32> -> vector<4x288xf32>
    %111 = arith.addf %106, %110 : vector<4x288xf32>
    %c6_84 = arith.constant 6 : index
    %c0_85 = arith.constant 0 : index
    %c0_86 = arith.constant 0 : index
    %112 = vector.load %arg5[%c6_84, %c0_85, %c0_86] : memref<9x4x32xbf16, #tpu.memory_space<vmem>>, vector<1x4x32xbf16>
    %113 = vector.shape_cast %112 : vector<1x4x32xbf16> to vector<4x32xbf16>
    %c0_87 = arith.constant 0 : index
    %c36 = arith.constant 36 : index
    %114 = vector.load %arg10[%c0_87, %c36] : memref<32x384xbf16, #tpu.memory_space<vmem>>, vector<32x288xbf16>
    %cst_88 = arith.constant dense<0.000000e+00> : vector<4x288xf32>
    %115 = tpu.matmul %113, %114, %cst_88 {dimension_numbers = #tpu.dot_dimension_numbers<[1], [0], [0], [1], [0, 0, 1, 1], [], []>} : vector<4x32xbf16>, vector<32x288xbf16>, vector<4x288xf32> -> vector<4x288xf32>
    %116 = arith.addf %111, %115 : vector<4x288xf32>
    %c7_89 = arith.constant 7 : index
    %c0_90 = arith.constant 0 : index
    %c0_91 = arith.constant 0 : index
    %117 = vector.load %arg5[%c7_89, %c0_90, %c0_91] : memref<9x4x32xbf16, #tpu.memory_space<vmem>>, vector<1x4x32xbf16>
    %118 = vector.shape_cast %117 : vector<1x4x32xbf16> to vector<4x32xbf16>
    %c0_92 = arith.constant 0 : index
    %c37 = arith.constant 37 : index
    %119 = vector.load %arg10[%c0_92, %c37] : memref<32x384xbf16, #tpu.memory_space<vmem>>, vector<32x288xbf16>
    %cst_93 = arith.constant dense<0.000000e+00> : vector<4x288xf32>
    %120 = tpu.matmul %118, %119, %cst_93 {dimension_numbers = #tpu.dot_dimension_numbers<[1], [0], [0], [1], [0, 0, 1, 1], [], []>} : vector<4x32xbf16>, vector<32x288xbf16>, vector<4x288xf32> -> vector<4x288xf32>
    %121 = arith.addf %116, %120 : vector<4x288xf32>
    %c8_94 = arith.constant 8 : index
    %c0_95 = arith.constant 0 : index
    %c0_96 = arith.constant 0 : index
    %122 = vector.load %arg5[%c8_94, %c0_95, %c0_96] : memref<9x4x32xbf16, #tpu.memory_space<vmem>>, vector<1x4x32xbf16>
    %123 = vector.shape_cast %122 : vector<1x4x32xbf16> to vector<4x32xbf16>
    %c0_97 = arith.constant 0 : index
    %c38 = arith.constant 38 : index
    %124 = vector.load %arg10[%c0_97, %c38] : memref<32x384xbf16, #tpu.memory_space<vmem>>, vector<32x288xbf16>
    %cst_98 = arith.constant dense<0.000000e+00> : vector<4x288xf32>
    %125 = tpu.matmul %123, %124, %cst_98 {dimension_numbers = #tpu.dot_dimension_numbers<[1], [0], [0], [1], [0, 0, 1, 1], [], []>} : vector<4x32xbf16>, vector<32x288xbf16>, vector<4x288xf32> -> vector<4x288xf32>
    %126 = arith.addf %121, %125 : vector<4x288xf32>
    %c0_99 = arith.constant 0 : index
    %c0_100 = arith.constant 0 : index
    %c0_101 = arith.constant 0 : index
    %127 = vector.load %arg7[%c0_99, %c0_100, %c0_101] : memref<2x4x1xf32, #tpu.memory_space<vmem>>, vector<1x4x1xf32>
    %128 = vector.shape_cast %127 : vector<1x4x1xf32> to vector<4x1xf32>
    %129 = vector.broadcast %128 : vector<4x1xf32> to vector<4x288xf32>
    %130 = arith.addf %126, %129 : vector<4x288xf32>
    %c1_102 = arith.constant 1 : index
    %c0_103 = arith.constant 0 : index
    %c0_104 = arith.constant 0 : index
    %131 = vector.load %arg7[%c1_102, %c0_103, %c0_104] : memref<2x4x1xf32, #tpu.memory_space<vmem>>, vector<1x4x1xf32>
    %132 = vector.shape_cast %131 : vector<1x4x1xf32> to vector<4x1xf32>
    %133 = vector.broadcast %5 : f32 to vector<4x1xf32>
    %134 = arith.mulf %133, %132 : vector<4x1xf32>
    %135 = vector.broadcast %134 : vector<4x1xf32> to vector<4x288xf32>
    %136 = arith.addf %130, %135 : vector<4x288xf32>
    %c0_105 = arith.constant 0 : index
    %c0_106 = arith.constant 0 : index
    %c19_107 = arith.constant 19 : index
    %137 = vector.load %arg3[%c0_105, %c0_106, %c19_107] : memref<1x4x384xf32, #tpu.memory_space<vmem>>, vector<1x4x288xf32>
    %138 = vector.shape_cast %137 : vector<1x4x288xf32> to vector<4x288xf32>
    %139 = arith.subf %138, %136 : vector<4x288xf32>
    %140 = vector.broadcast %6 : vector<1x288xf32> to vector<4x288xf32>
    %141 = arith.mulf %139, %140 : vector<4x288xf32>
    %cst_108 = arith.constant 0.000000e+00 : f32
    %142 = vector.broadcast %cst_108 : f32 to vector<1x8x128xf32>
    %143 = arith.mulf %141, %141 : vector<4x288xf32>
    %144 = vector.shape_cast %143 : vector<4x288xf32> to vector<1x4x288xf32>
    %cst_109 = arith.constant dense<0.000000e+00> : vector<1xf32>
    %145 = vector.multi_reduction <add>, %144, %cst_109 [1, 2] : vector<1x4x288xf32> to vector<1xf32>
    %146 = vector.shape_cast %145 : vector<1xf32> to vector<1x1x1xf32>
    %147 = vector.extract %146[0, 0, 0] : f32 from vector<1x1x1xf32>
    %148 = vector.broadcast %147 : f32 to vector<1x8x128xf32>
    %149 = arith.addf %142, %148 : vector<1x8x128xf32>
    %c0_110 = arith.constant 0 : index
    %c0_111 = arith.constant 0 : index
    %c0_112 = arith.constant 0 : index
    %150 = vector.load %arg9[%c0_110, %c0_111, %c0_112] : memref<1x8x128xf32, #tpu.memory_space<vmem>>, vector<1x8x128xf32>
    tpu.vector_store %arg9[%c0_110, %c0_111, %c0_112], %149 {strides = array<i32>} : memref<1x8x128xf32, #tpu.memory_space<vmem>>, vector<1x8x128xf32>,
    return
  }
  func.func @transform_0(%arg0: i32) -> (i32, i32) {
    %c0_i32 = arith.constant 0 : i32
    %c0_i32_0 = arith.constant 0 : i32
    %c0_i32_1 = arith.constant 0 : i32
    return %c0_i32, %c0_i32_0 : i32, i32
  }
  func.func @transform_1(%arg0: i32) -> (i32, i32, i32) {
    %c0_i32 = arith.constant 0 : i32
    %c0_i32_0 = arith.constant 0 : i32
    %c0_i32_1 = arith.constant 0 : i32
    return %arg0, %c0_i32, %c0_i32_0 : i32, i32, i32
  }
  func.func @transform_2(%arg0: i32) -> (i32, i32, i32) {
    %c0_i32 = arith.constant 0 : i32
    %c0_i32_0 = arith.constant 0 : i32
    %c0_i32_1 = arith.constant 0 : i32
    return %arg0, %c0_i32, %c0_i32_0 : i32, i32, i32
  }
  func.func @transform_3(%arg0: i32) -> (i32, i32, i32) {
    %c0_i32 = arith.constant 0 : i32
    %c0_i32_0 = arith.constant 0 : i32
    %c0_i32_1 = arith.constant 0 : i32
    %c0_i32_2 = arith.constant 0 : i32
    return %c0_i32, %c0_i32_0, %c0_i32_1 : i32, i32, i32
  }
  func.func @transform_4(%arg0: i32) -> (i32, i32, i32) {
    %c0_i32 = arith.constant 0 : i32
    %c0_i32_0 = arith.constant 0 : i32
    %c0_i32_1 = arith.constant 0 : i32
    %c0_i32_2 = arith.constant 0 : i32
    return %c0_i32, %c0_i32_0, %c0_i32_1 : i32, i32, i32
  }
  func.func @transform_5(%arg0: i32) -> (i32, i32, i32) {
    %c0_i32 = arith.constant 0 : i32
    %c0_i32_0 = arith.constant 0 : i32
    %c0_i32_1 = arith.constant 0 : i32
    %c0_i32_2 = arith.constant 0 : i32
    return %c0_i32, %c0_i32_0, %c0_i32_1 : i32, i32, i32
  }
  func.func @transform_6(%arg0: i32) -> (i32, i32, i32) {
    %c0_i32 = arith.constant 0 : i32
    %c0_i32_0 = arith.constant 0 : i32
    %c0_i32_1 = arith.constant 0 : i32
    %c0_i32_2 = arith.constant 0 : i32
    return %c0_i32, %c0_i32_0, %c0_i32_1 : i32, i32, i32
  }
  func.func @transform_7(%arg0: i32) -> (i32, i32) {
    %c0_i32 = arith.constant 0 : i32
    %c0_i32_0 = arith.constant 0 : i32
    %c0_i32_1 = arith.constant 0 : i32
    return %c0_i32, %c0_i32_0 : i32, i32
  }
  func.func @transform_8(%arg0: i32) -> (i32, i32, i32) {
    %c0_i32 = arith.constant 0 : i32
    %c0_i32_0 = arith.constant 0 : i32
    %c0_i32_1 = arith.constant 0 : i32
    return %arg0, %c0_i32, %c0_i32_0 : i32, i32, i32
  }
}

</mosaic_0001>

<bundles_post_ra>
// kernel: ddpm_forward.1
= control target key start
LH: loop header
LB: loop body
LE: loop exit
PB: predicated region body
PF: predicated region fallthrough
CT: control target
= control target key end

     0   :  { %13 = vsyncpa [#allocation4], 0  ;;  %s2681_s27 = smov 0   ;;  %s3426_s0 = inlined_call_operand.vmem [shape: f32[2,3], index: 0, kind: input, shape index: {}]   ;;  %s3427_s1 = inlined_call_operand.vmem [shape: f32[2,4,384], index: 1, kind: input, shape index: {}]   ;;  %s3428_s2 = inlined_call_operand.vmem [shape: f32[2,4,384], index: 2, kind: input, shape index: {}]   ;;  %s3429_s3 = inlined_call_operand.vmem [shape: bf16[9,32,4], index: 3, kind: input, shape index: {}]   ;;  %s3430_s4 = inlined_call_operand.vmem [shape: bf16[9,4,32], index: 4, kind: input, shape index: {}]   ;;  %s3431_s5 = inlined_call_operand.vmem [shape: f32[2,32,1], index: 5, kind: input, shape index: {}]   ;;  %s3432_s6 = inlined_call_operand.vmem [shape: f32[2,4,1], index: 6, kind: input, shape index: {}]   ;;  %s3433_s7 = inlined_call_operand.vmem [shape: f32[1,288], index: 7, kind: input, shape index: {}]   ;;  %s3434_s8 = inlined_call_operand.vmem [shape: f32[2,8,128], index: 8, kind: output, shape index: {}]  }
   0x1 LB: > { %s2304_s28 = sadd.s32 4294967295, %s2623_s27   ;;  %p2306_p0 = scmp.ge.s32.totalorder %s2623_s27, 1  ;;  %s2623_s27 = sphi %s2681_s27, %s19_s27  }
   0x2   : > { %p228_p1 = scmp.lt.s32.totalorder %s2623_s27, 3  ;;  %s240_s9 = sshll.u32 %s3426_s0, 4  ;;  %s241_s9 = int_to_ptr.vmem [resolvable:$true] %s240_s9 }
   0x3   : > { %p2574_p3 = scmp.eq.s32.totalorder %s2304_s28, 0  ;;  %s2625_s10 = smov [#allocation3]  }
   0x4   : > { %p229_p2 = pnand %p2306_p0, %p228_p1 }
   0x6   : > { %p2570_p4 = pneg %p229_p2  ;;  %284 = sbr.rel (%p229_p2) target bundleno = 1473 (0x5c1), region = 52 }
   0x8   : > { %p2571_p5 = pnand %p2574_p3, %p2570_p4 }
   0xa   : > { %2573 = dma.vmem_to_smem (!%p2571_p5), %s241_s9, 32, %s2625_s10, [#allocation4]  }
   0xb   : > { %2618 = dma.done.wait (%p2574_p3), [#allocation4], 32  }
   0xc   : > { %2620 = vsyncadd (%p2574_p3), [#allocation4], 4294967264 }
   0xd   : > { %291 = sfence }
   0xe   : > { %p324_p6 = scmp.lt.s32.totalorder %s2304_s28, 1  ;;  %s2692_s11 = sshll.u32 %s2304_s28, 7  ;;  %vm414_vm0 = vcmask 1041408   ;;  %v2539_v24 = vld [vmem:[%s3429_s3] sm:$0xff]  ;;  %vm407_vm1 = vcmask 31744   ;;  %v2741_v25 = vld [vmem:[%s3429_s3 + $0x8] sm:$0xff] }
   0xf   : > { %s340_s12 = sld [smem:[#allocation3 + %s2692_s11]]  ;;  %s341_s13 = sadd.s32 1, %s2692_s11  ;;  %v2541_v29 = vld [vmem:[%s3429_s3 + $0x10] sm:$0xff]  ;;  %vm584_vm2 = vcmask 1031168   ;;  %vm404_vm3 = vcmask 1039360   ;;  %v2542_v43 = vld [vmem:[%s3429_s3 + $0x18] sm:$0xff] }
  0x10   : > { %s3438_s28 = smov (!%p324_p6, %s2304_s28), 1  ;;  %s342_s14 = sld [smem:[#allocation3 + %s341_s13]]  ;;  %v2543_v47 = vld [vmem:[%s3429_s3 + $0x20] sm:$0xff]  ;;  %vm692_vm4 = vcmask 900096   ;;  %v2544_v55 = vld [vmem:[%s3429_s3 + $0x28] sm:$0xff]  ;;  %v2545_v56 = vld [vmem:[%s3429_s3 + $0x30] sm:$0xff] }
  0x11   : > { %s2563_s15 = smul.u32 12, %s3438_s28  ;;  %s2626_s22 = smov 127   ;;  %vm800_vm5 = vcmask 891904   ;;  %vm908_vm6 = vcmask 883712   ;;  %vm1016_vm7 = vcmask 752640   ;;  %vm1124_vm8 = vcmask 744448  }
  0x12   : > { %s2627_s23 = smov 126   ;;  %s2628_s24 = smov 110   ;;  %vm1232_vm9 = vcmask 736256   ;;  %vm1489_vm10 = vcmask 1043608   ;;  %vm1490_vm11 = vcmask 1047556   ;;  %vm1472_vm12 = vcmask 154624  }
  0x13   : > { %s328_s18 = scalar_lea.vmem %s3427_s1, %s2563_s15  ;;  %s2705_s21 = scalar_lea.vmem %s3428_s2, %s2563_s15  ;;  %vm3157_vm13 = vmor %vm1490_vm11, %vm1489_vm10  ;;  %vm1493_vm14 = vcmask 412672   ;;  %vm1560_vm15 = vcmask 261120  }
  0x14   : > { %v347_v0 = vld [vmem:[%s328_s18 + $0x8] sm:$0xf]  ;;  %v346_v3 = vld [vmem:[%s328_s18] sm:$0xff]  ;;  %s2629_s25 = smov 109   ;;  %s2630_s26 = smov 108  }
  0x15   : > { %v348_v1 = vstv %s340_s12  ;;  %v352_v2 = vld [vmem:[%s2705_s21 + $0x8] sm:$0xf]  ;;  %v351_v6 = vld [vmem:[%s2705_s21] sm:$0xff]  ;;  %s2631_s29 = smov 92   ;;  %s2632_s30 = smov 91  }
  0x16   : > { %v350_v4 = vmul.f32 %v348_v1, %v347_v0  ;;  %v349_v5 = vmul.f32 %v348_v1, %v346_v3  ;;  %v353_v7 = vstv %s342_s14  ;;  %s2633_s9 = smov 90   ;;  %s343_s13 = sadd.s32 2, %s2692_s11 }
  0x17   : > { %v355_v8 = vmul.f32 %v353_v7, %v352_v2  ;;  %v354_v9 = vmul.f32 %v353_v7, %v351_v6  ;;  %s344_s14 = sld [smem:[#allocation3 + %s343_s13]]  ;;  %s2635_s15 = smov 19  }
  0x19   : > { %v357_v10 = vadd.f32 %v355_v8, %v350_v4  ;;  %v356_v11 = vadd.f32 %v354_v9, %v349_v5  ;;  %v2546_v5 = vld [vmem:[%s3429_s3 + $0x38] sm:$0xff] }
  0x1b   : > { %362 = vst [vmem:[#allocation1 + $0x10] ss:$2 sm:$0xff] %v357_v10  ;;  %v2549_v10 = vld [vmem:[%s3429_s3 + $0x50] sm:$0xff] }
  0x1c   : > { %360 = vst [vmem:[#allocation1] ss:$2 sm:$0xff] %v356_v11 }
  0x22   : > { %v365_v12 = vld.sshfl [vmem:[#allocation1 + $0x10] sm:$0xff pattern:$0x75316420] }
  0x23   : > { %v370_v13 = vpack.c.bf16 %v365_v12, %v365_v12  ;;  %v363_v14 = vld.sshfl [vmem:[#allocation1] sm:$0xff pattern:$0x75316420]  ;;  %v364_v15 = vld.sshfl [vmem:[#allocation1 + $0x8] sm:$0xff pattern:$0x75316420] }
  0x24   : > { %v369_v16 = vpack.c.bf16 %v364_v15, %v363_v14 }
  0x25   : > { %v394_v17 = vunpack.c.l.b16 %v370_v13 }
  0x26   : > { %v392_v18 = vunpack.c.l.b16 %v369_v16  ;;  %v393_v19 = vunpack.c.h.b16 %v369_v16  ;;  %v2547_v16 = vld [vmem:[%s3429_s3 + $0x40] sm:$0xff] }
  0x27   : > { %v397_v20 = vpack.c.b16 %v394_v17, %v394_v17 }
  0x28   : > { %v395_v21 = vpack.c.b16 %v392_v18, %v392_v18  ;;  %v396_v22 = vpack.c.b16 %v393_v19, %v393_v19  ;;  %v2550_v19 = vld [vmem:[%s3429_s3 + $0x58] sm:$0xff] }
  0x29   : > { %402 = vrot.lane.b32.xlu1 %v397_v20, %s2626_s22  ;;  %v504_v37 = vsel %vm414_vm0, %v397_v20, 0 }
  0x2a   : > { %398 = vrot.lane.b32.xlu0 %v395_v21, %s2626_s22  ;;  %580 = vrot.lane.b32.xlu2 %v396_v22, %s2627_s23  ;;  %v498_v23 = vsel %vm414_vm0, %v395_v21, 0  ;;  %v501_v33 = vsel %vm414_vm0, %v396_v22, 0 }
  0x2b   : > { %513 = vmatpush.bf16.msra.mxu3 %v498_v23  ;;  %v2839_v23 = vld [vmem:[%s3429_s3 + $0x60] sm:$0xff] }
  0x2e   : > { %2341 = vmatmul.msk.bf16.vlgmr.msra.gmra.mxu3 %vm407_vm1, %v2539_v24 }
  0x31   : > { %578 = vrot.lane.b32.xlu1 %v395_v21, %s2627_s23 }
  0x32   : > { %400 = vrot.lane.b32.xlu0 %v396_v22, %s2626_s22  ;;  %686 = vrot.lane.b32.xlu2 %v395_v21, %s2628_s24 }
  0x39   : > { %582 = vrot.lane.b32.xlu1 %v397_v20, %s2627_s23 }
  0x3a   : > { %688 = vrot.lane.b32.xlu0 %v396_v22, %s2628_s24  ;;  %690 = vrot.lane.b32.xlu2 %v397_v20, %s2628_s24 }
  0x3e   : > { %2342 = vmatmul.msk.bf16.gmra.mxu3 %vm407_vm1, %v2741_v25 }
  0x41   : > { %796 = vrot.lane.b32.xlu1 %v396_v22, %s2629_s25 }
  0x42   : > { %794 = vrot.lane.b32.xlu0 %v395_v21, %s2629_s25  ;;  %798 = vrot.lane.b32.xlu2 %v397_v20, %s2629_s25 }
  0x49   : > { %906 = vrot.lane.b32.xlu1 %v397_v20, %s2630_s26 }
  0x4a   : > { %904 = vrot.lane.b32.xlu0 %v396_v22, %s2630_s26  ;;  %902 = vrot.lane.b32.xlu2 %v395_v21, %s2630_s26 }
  0x51   : > { %1012 = vrot.lane.b32.xlu1 %v396_v22, %s2631_s29 }
  0x52   : > { %1010 = vrot.lane.b32.xlu0 %v395_v21, %s2631_s29  ;;  %1118 = vrot.lane.b32.xlu2 %v395_v21, %s2632_s30 }
  0x59   : > { %1014 = vrot.lane.b32.xlu1 %v397_v20, %s2631_s29 }
  0x5a   : > { %1120 = vrot.lane.b32.xlu0 %v396_v22, %s2632_s30  ;;  %1122 = vrot.lane.b32.xlu2 %v397_v20, %s2632_s30 }
  0x61   : > { %1228 = vrot.lane.b32.xlu1 %v396_v22, %s2633_s9 }
  0x62   : > { %1226 = vrot.lane.b32.xlu0 %v395_v21, %s2633_s9  ;;  %1230 = vrot.lane.b32.xlu2 %v397_v20, %s2633_s9  ;;  %v2548_v21 = vld [vmem:[%s3429_s3 + $0x48] sm:$0xff] }
  0x84   : > { %v581_v30 = vpop.permute.xlu2 %580 }
  0x8c   : > { %v687_v41 = vpop.permute.xlu2 %686 }
  0x94   : > { %v691_v50 = vpop.permute.xlu2 %690 }
  0x95   : > { %v708_v52 = vsel %vm414_vm0, %v691_v50, 0 }
  0x9b   : > { %v403_v26 = vpop.permute.xlu1 %402 }
  0x9c   : > { %v399_v27 = vpop.permute.xlu0 %398  ;;  %v422_v28 = vsel %vm414_vm0, %v403_v26, 0  ;;  %v799_v57 = vpop.permute.xlu2 %798 }
  0x9d   : > { %469 = vmatpush.bf16.msra.mxu2 %v422_v28  ;;  %v816_v59 = vsel %vm414_vm0, %v799_v57, 0 }
  0xa0   : > { %2331 = vmatmul.msk.bf16.vlgmr.msra.gmra.mxu2 %vm407_vm1, %v2541_v29 }
  0xa3   : > { %v579_v31 = vpop.permute.xlu1 %578 }
  0xa4   : > { %v401_v32 = vpop.permute.xlu0 %400  ;;  %v585_v34 = vsel %vm584_vm2, %v579_v31, %v581_v30  ;;  %v903_v1 = vpop.permute.xlu2 %902 }
  0xa5   : > { %v405_v35 = vsel %vm404_vm3, %v399_v27, %v401_v32  ;;  %v406_v36 = vsel %vm404_vm3, %v401_v32, %v403_v26  ;;  %v594_v38 = vsel %vm414_vm0, %v585_v34, 0 }
  0xa6   : > { %v416_v39 = vsel %vm414_vm0, %v405_v35, 0  ;;  %v419_v40 = vsel %vm414_vm0, %v406_v36, 0  ;;  %609 = vmatpush.bf16.msrb.mxu2 %v594_v38 }
  0xa7   : > { %431 = vmatpush.bf16.msra.mxu0 %v416_v39  ;;  %450 = vmatpush.bf16.msra.mxu1 %v419_v40 }
  0xaa   : > { %2327 = vmatmul.msk.bf16.vlgmr.msra.gmra.mxu0 %vm407_vm1, %v2541_v29  ;;  %2329 = vmatmul.msk.bf16.vlgmr.msra.gmra.mxu1 %vm407_vm1, %v2541_v29 }
  0xab   : > { %532 = vmatpush.bf16.msrb.mxu0 %v501_v33  ;;  %551 = vmatpush.bf16.msrb.mxu1 %v504_v37  ;;  %v583_v42 = vpop.permute.xlu1 %582  ;;  %v2856_v33 = vld [vmem:[%s3429_s3 + $0x68] sm:$0xff] }
  0xac   : > { %v600_v44 = vsel %vm414_vm0, %v583_v42, 0  ;;  %v586_v45 = vsel %vm584_vm2, %v581_v30, %v583_v42  ;;  %v689_v48 = vpop.permute.xlu0 %688 }
  0xad   : > { %v597_v46 = vsel %vm414_vm0, %v586_v45, 0  ;;  %v693_v49 = vsel %vm692_vm4, %v687_v41, %v689_v48  ;;  %v694_v53 = vsel %vm692_vm4, %v689_v48, %v691_v50 }
  0xae   : > { %628 = vmatpush.bf16.msrb.mxu3 %v597_v46  ;;  %v702_v51 = vsel %vm414_vm0, %v693_v49, 0  ;;  %v705_v54 = vsel %vm414_vm0, %v694_v53, 0 }
  0xaf   : > { %647 = vmatpush.bf16.msra.mxu0 %v600_v44  ;;  %717 = vmatpush.bf16.msra.mxu1 %v702_v51 }
  0xb0   : > { %2332 = vmatmul.msk.bf16.gmra.mxu2 %vm407_vm1, %v2542_v43 }
  0xb1   : > { %2361 = vmatmul.msk.bf16.vlgmr.msrb.gmra.mxu3 %vm407_vm1, %v2543_v47  ;;  %736 = vmatpush.bf16.msra.mxu2 %v705_v54  ;;  %v515_v22 = vpop.f32.mrf.mxu3 }
  0xb2   : > { %755 = vmatpush.bf16.msra.mxu3 %v708_v52 }
  0xb3   : > { %v797_v58 = vpop.permute.xlu1 %796 }
  0xb4   : > { %v802_v60 = vsel %vm800_vm5, %v797_v58, %v799_v57  ;;  %v795_v61 = vpop.permute.xlu0 %794 }
  0xb5   : > { %v813_v62 = vsel %vm414_vm0, %v802_v60, 0  ;;  %v801_v63 = vsel %vm800_vm5, %v795_v61, %v797_v58  ;;  %v2554_v61 = vld [vmem:[%s3429_s3 + $0x78] sm:$0xff] }
  0xb6   : > { %v810_v0 = vsel %vm414_vm0, %v801_v63, 0 }
  0xba   : > { %2328 = vmatmul.msk.bf16.gmra.mxu0 %vm407_vm1, %v2542_v43  ;;  %2330 = vmatmul.msk.bf16.gmra.mxu1 %vm407_vm1, %v2542_v43  ;;  %v2553_v43 = vld [vmem:[%s3429_s3 + $0x70] sm:$0xff] }
  0xbb   : > { %v907_v6 = vpop.permute.xlu1 %906 }
  0xbc   : > { %v905_v2 = vpop.permute.xlu0 %904  ;;  %v924_v8 = vsel %vm414_vm0, %v907_v6, 0 }
  0xbd   : > { %v909_v3 = vsel %vm908_vm6, %v903_v1, %v905_v2  ;;  %v910_v7 = vsel %vm908_vm6, %v905_v2, %v907_v6  ;;  %v2634_v1 = vmov 0  }
  0xbe   : > { %v918_v4 = vsel %vm414_vm0, %v909_v3, 0  ;;  %v921_v9 = vsel %vm414_vm0, %v910_v7, 0  ;;  %2596 = vset.pattern.permute.xlu1 %v2634_v1  ;;  %1409 = vst [vmem:[#allocation2] sm:$0xff] %v2634_v1  ;;  %2595 = vset.pattern.permute.xlu0 %v2634_v1 }
  0xbf   : > { %933 = vmatpush.bf16.msrb.mxu3 %v918_v4  ;;  %1410 = vst [vmem:[#allocation2 + $0x8] sm:$0xf] %v2634_v1  ;;  %2597 = vset.pattern.permute.xlu2 %v2634_v1 }
  0xc0   : > { %2359 = vmatmul.msk.bf16.vlgmr.msrb.gmra.mxu2 %vm407_vm1, %v2543_v47  ;;  %1411 = vst [vmem:[#allocation2 + $0xc] sm:$0xff] %v2634_v1 }
  0xc1   : > { %2362 = vmatmul.msk.bf16.gmra.mxu3 %vm407_vm1, %v2544_v55  ;;  %863 = vmatpush.bf16.msrb.mxu2 %v816_v59  ;;  %1412 = vst [vmem:[#allocation2 + $0x14] sm:$0xf] %v2634_v1 }
  0xc2   : > { %1413 = vst [vmem:[#allocation2 + $0x18] sm:$0xff] %v2634_v1 }
  0xc3   : > { %v1013_v11 = vpop.permute.xlu1 %1012  ;;  %1414 = vst [vmem:[#allocation2 + $0x20] sm:$0xf] %v2634_v1 }
  0xc4   : > { %v1011_v12 = vpop.permute.xlu0 %1010  ;;  %1415 = vst [vmem:[#allocation2 + $0x24] sm:$0xff] %v2634_v1 }
  0xc5   : > { %v1017_v14 = vsel %vm1016_vm7, %v1011_v12, %v1013_v11  ;;  %1416 = vst [vmem:[#allocation2 + $0x2c] sm:$0xf] %v2634_v1 }
  0xc6   : > { %v1026_v17 = vsel %vm414_vm0, %v1017_v14, 0 }
  0xca   : > { %2343 = vmatmul.msk.bf16.vlgmr.msrb.gmra.mxu0 %vm407_vm1, %v2539_v24  ;;  %2345 = vmatmul.msk.bf16.vlgmr.msrb.gmra.mxu1 %vm407_vm1, %v2539_v24  ;;  %v1119_v24 = vpop.permute.xlu2 %1118 }
  0xcb   : > { %844 = vmatpush.bf16.msrb.mxu1 %v813_v62  ;;  %825 = vmatpush.bf16.msrb.mxu0 %v810_v0  ;;  %v1015_v13 = vpop.permute.xlu1 %1014  ;;  %v1322_v0 = vld [vmem:[%s3431_s5 + $0x18] sm:$0xff] }
  0xcc   : > { %v1018_v15 = vsel %vm1016_vm7, %v1013_v11, %v1015_v13  ;;  %v1032_v20 = vsel %vm414_vm0, %v1015_v13, 0  ;;  %v1121_v27 = vpop.permute.xlu0 %1120  ;;  %1340 = vperm.xlu1 %2596, %v1322_v0  }
  0xcd   : > { %v1029_v18 = vsel %vm414_vm0, %v1018_v15, 0  ;;  %v1125_v29 = vsel %vm1124_vm8, %v1119_v24, %v1121_v27  ;;  %v1321_v15 = vld [vmem:[%s3431_s5 + $0x10] sm:$0xff] }
  0xce   : > { %v1134_v31 = vsel %vm414_vm0, %v1125_v29, 0  ;;  %1335 = vperm.xlu0 %2595, %v1321_v15   ;;  %v2555_v29 = vld [vmem:[%s3429_s3 + $0x80] sm:$0xff] }
  0xd0   : > { %2360 = vmatmul.msk.bf16.gmra.mxu2 %vm407_vm1, %v2544_v55 }
  0xd1   : > { %2381 = vmatmul.msk.bf16.vlgmr.msra.gmra.mxu3 %vm407_vm1, %v2545_v56 }
  0xd2   : > { %1060 = vmatpush.bf16.msra.mxu3 %v1029_v18  ;;  %v1123_v26 = vpop.permute.xlu2 %1122 }
  0xd3   : > { %v1140_v28 = vsel %vm414_vm0, %v1123_v26, 0  ;;  %v1126_v30 = vsel %vm1124_vm8, %v1121_v27, %v1123_v26  ;;  %v1229_v50 = vpop.permute.xlu1 %1228  ;;  %v1320_v27 = vld [vmem:[%s3431_s5 + $0x8] sm:$0xff] }
  0xd4   : > { %v1137_v32 = vsel %vm414_vm0, %v1126_v30, 0  ;;  %v1227_v53 = vpop.permute.xlu0 %1226 }
  0xd6   : > { %1330 = vperm.xlu0 %2595, %v1320_v27  }
  0xda   : > { %2344 = vmatmul.msk.bf16.gmra.mxu0 %vm407_vm1, %v2741_v25  ;;  %2346 = vmatmul.msk.bf16.gmra.mxu1 %vm407_vm1, %v2741_v25  ;;  %v2844_v25 = vpop.f32.mrf.mxu3  ;;  %v1231_v49 = vpop.permute.xlu2 %1230 }
  0xdb   : > { %v1248_v51 = vsel %vm414_vm0, %v1231_v49, 0  ;;  %v1234_v52 = vsel %vm1232_vm9, %v1229_v50, %v1231_v49 }
  0xdc   : > { %v1245_v54 = vsel %vm414_vm0, %v1234_v52, 0 }
  0xe0   : > { %2379 = vmatmul.msk.bf16.vlgmr.msra.gmra.mxu2 %vm407_vm1, %v2545_v56 }
  0xe1   : > { %2382 = vmatmul.msk.bf16.gmra.mxu3 %vm407_vm1, %v2546_v5  ;;  %1041 = vmatpush.bf16.msra.mxu2 %v1026_v17  ;;  %v2473_v17 = vld [vmem:[%s3431_s5 + $0x20] sm:$0xff] }
  0xe2   : > { %v520_v34 = vpop.f32.mrf.mxu3 }
  0xea   : > { %2363 = vmatmul.msk.bf16.vlgmr.msra.gmra.mxu0 %vm407_vm1, %v2543_v47  ;;  %2377 = vmatmul.msk.bf16.vlgmr.msra.gmra.mxu1 %vm407_vm1, %v2545_v56  ;;  %v2866_v40 = vpop.f32.mrf.mxu3 }
  0xeb   : > { %971 = vmatpush.bf16.msra.mxu1 %v924_v8  ;;  %952 = vmatpush.bf16.msra.mxu0 %v921_v9  ;;  %v2476_v9 = vld [vmem:[%s3431_s5 + $0x38] sm:$0xff] }
  0xf0   : > { %2380 = vmatmul.msk.bf16.gmra.mxu2 %vm407_vm1, %v2546_v5 }
  0xf1   : > { %2413 = vmatmul.msk.bf16.vlgmr.msrb.gmra.mxu3 %vm407_vm1, %v2549_v10 }
  0xf2   : > { %1187 = vmatpush.bf16.msrb.mxu3 %v1140_v28 }
  0xfa   : > { %2364 = vmatmul.msk.bf16.gmra.mxu0 %vm407_vm1, %v2544_v55  ;;  %2378 = vmatmul.msk.bf16.gmra.mxu1 %vm407_vm1, %v2546_v5  ;;  %v1233_v55 = vsel %vm1232_vm9, %v1227_v53, %v1229_v50  ;;  %v2474_v53 = vld [vmem:[%s3431_s5 + $0x28] sm:$0xff] }
  0xfb   : > { %v1242_v57 = vsel %vm414_vm0, %v1233_v55, 0  ;;  %vm2160_vm0 = vcmask 1043456  }
 0x100   : > { %2399 = vmatmul.msk.bf16.vlgmr.msrb.gmra.mxu2 %vm407_vm1, %v2547_v16 }
 0x101   : > { %2414 = vmatmul.msk.bf16.gmra.mxu3 %vm407_vm1, %v2550_v19  ;;  %1168 = vmatpush.bf16.msrb.mxu2 %v1137_v32  ;;  %v2475_v32 = vld [vmem:[%s3431_s5 + $0x30] sm:$0xff] }
 0x10a   : > { %2395 = vmatmul.msk.bf16.vlgmr.msrb.gmra.mxu0 %vm407_vm1, %v2547_v16  ;;  %2397 = vmatmul.msk.bf16.vlgmr.msrb.gmra.mxu1 %vm407_vm1, %v2547_v16 }
 0x10b   : > { %1079 = vmatpush.bf16.msrb.mxu0 %v1032_v20  ;;  %1149 = vmatpush.bf16.msrb.mxu1 %v1134_v31 }
 0x110   : > { %2400 = vmatmul.msk.bf16.gmra.mxu2 %vm407_vm1, %v2548_v21 }
 0x111   : > { %2433 = vmatmul.msk.bf16.vlgmr.msra.gmra.mxu3 %vm407_vm1, %v2839_v23 }
 0x11a   : > { %2396 = vmatmul.msk.bf16.gmra.mxu0 %vm407_vm1, %v2548_v21  ;;  %2398 = vmatmul.msk.bf16.gmra.mxu1 %vm407_vm1, %v2548_v21 }
 0x120   : > { %2431 = vmatmul.msk.bf16.vlgmr.msra.gmra.mxu2 %vm407_vm1, %v2839_v23 }
 0x121   : > { %2434 = vmatmul.msk.bf16.gmra.mxu3 %vm407_vm1, %v2856_v33  ;;  %1295 = vmatpush.bf16.msra.mxu2 %v1248_v51 }
 0x123   : > { %v471_v35 = vpop.f32.mrf.mxu2 }
 0x127   : > { %v433_v36 = vpop.f32.mrf.mxu0  ;;  %v452_v37 = vpop.f32.mrf.mxu1 }
 0x128   : > { %v516_v38 = vadd.f32 %v515_v22, %v433_v36 }
 0x12a   : > { %2415 = vmatmul.msk.bf16.vlgmr.msra.gmra.mxu0 %vm407_vm1, %v2549_v10  ;;  %2417 = vmatmul.msk.bf16.vlgmr.msra.gmra.mxu1 %vm407_vm1, %v2549_v10  ;;  %v2916_v10 = vstv %s344_s14 }
 0x12b   : > { %v2864_v39 = vpop.f32.mrf.mxu2  ;;  %1276 = vmatpush.bf16.msra.mxu1 %v1245_v54  ;;  %1257 = vmatpush.bf16.msra.mxu0 %v1242_v57  ;;  %v1364_v11 = vmul.f32 %v2476_v9, %v2916_v10  ;;  %v1362_v55 = vmul.f32 %v2474_v53, %v2916_v10 }
 0x12d   : > { %1382 = vperm.xlu1 %2596, %v1364_v11  }
 0x12f   : > { %v2868_v41 = vpop.f32.mrf.mxu0  ;;  %v2870_v42 = vpop.f32.mrf.mxu1 }
 0x130   : > { %2432 = vmatmul.msk.bf16.gmra.mxu2 %vm407_vm1, %v2856_v33 }
 0x131   : > { %2453 = vmatmul.msk.bf16.vlgmr.msrb.gmra.mxu3 %vm407_vm1, %v2553_v43 }
 0x133   : > { %v2878_v44 = vpop.f32.mrf.mxu2 }
 0x134   : > { %v630_v45 = vpop.f32.mrf.mxu3 }
 0x137   : > { %v438_v46 = vpop.f32.mrf.mxu0  ;;  %v2880_v47 = vpop.f32.mrf.mxu1 }
 0x138   : > { %v521_v48 = vadd.f32 %v520_v34, %v438_v46  ;;  %v1319_v46 = vld [vmem:[%s3431_s5] sm:$0xff] }
 0x13a   : > { %2416 = vmatmul.msk.bf16.gmra.mxu0 %vm407_vm1, %v2550_v19  ;;  %2418 = vmatmul.msk.bf16.gmra.mxu1 %vm407_vm1, %v2550_v19  ;;  %v1361_v19 = vmul.f32 %v2473_v17, %v2916_v10 }
 0x13b   : > { %v2888_v56 = vpop.f32.mrf.mxu2 }
 0x13c   : > { %v2891_v58 = vpop.f32.mrf.mxu3  ;;  %1367 = vperm.xlu1 %2596, %v1361_v19  }
 0x13f   : > { %v2893_v59 = vpop.f32.mrf.mxu0  ;;  %v2895_v60 = vpop.f32.mrf.mxu1 }
 0x140   : > { %2451 = vmatmul.msk.bf16.vlgmr.msrb.gmra.mxu2 %vm407_vm1, %v2553_v43 }
 0x141   : > { %2454 = vmatmul.msk.bf16.gmra.mxu3 %vm407_vm1, %v2554_v61 }
 0x143   : > { %v611_v62 = vpop.f32.mrf.mxu2 }
 0x144   : > { %v2903_v63 = vadd.f32 %v611_v62, %v516_v38  ;;  %v635_v2 = vpop.f32.mrf.mxu3 }
 0x147   : > { %v534_v3 = vpop.f32.mrf.mxu0  ;;  %v553_v4 = vpop.f32.mrf.mxu1 }
 0x148   : > { %v535_v5 = vadd.f32 %v534_v3, %v452_v37  ;;  %v554_v6 = vadd.f32 %v553_v4, %v471_v35 }
 0x14a   : > { %v660_v7 = vadd.f32 %v630_v45, %v535_v5  ;;  %2435 = vmatmul.msk.bf16.vlgmr.msrb.gmra.mxu0 %vm407_vm1, %v2839_v23  ;;  %2449 = vmatmul.msk.bf16.vlgmr.msrb.gmra.mxu1 %vm407_vm1, %v2553_v43 }
 0x14b   : > { %v2911_v8 = vpop.f32.mrf.mxu2 }
 0x14c   : > { %v2924_v14 = vpop.f32.mrf.mxu3 }
 0x14f   : > { %v2919_v12 = vpop.f32.mrf.mxu0  ;;  %v2921_v13 = vpop.f32.mrf.mxu1 }
 0x150   : > { %2452 = vmatmul.msk.bf16.gmra.mxu2 %vm407_vm1, %v2554_v61 }
 0x153   : > { %v616_v16 = vpop.f32.mrf.mxu2 }
 0x154   : > { %v665_v18 = vadd.f32 %v616_v16, %v521_v48  ;;  %v757_v26 = vpop.f32.mrf.mxu3  ;;  %v2556_v48 = vld [vmem:[%s3429_s3 + $0x88] sm:$0xff] }
 0x157   : > { %v539_v20 = vpop.f32.mrf.mxu0  ;;  %v558_v21 = vpop.f32.mrf.mxu1 }
 0x158   : > { %v540_v22 = vadd.f32 %v539_v20, %v2880_v47  ;;  %v559_v23 = vadd.f32 %v558_v21, %v2878_v44 }
 0x15a   : > { %v666_v24 = vadd.f32 %v635_v2, %v540_v22  ;;  %2436 = vmatmul.msk.bf16.gmra.mxu0 %vm407_vm1, %v2856_v33  ;;  %2450 = vmatmul.msk.bf16.gmra.mxu1 %vm407_vm1, %v2554_v61  ;;  %v1363_v33 = vmul.f32 %v2475_v32, %v2916_v10 }
 0x15b   : > { %v2941_v28 = vpop.f32.mrf.mxu2 }
 0x15c   : > { %v2955_v36 = vpop.f32.mrf.mxu3  ;;  %1377 = vperm.xlu2 %2597, %v1363_v33  }
 0x15f   : > { %v2946_v30 = vpop.f32.mrf.mxu0  ;;  %v2948_v31 = vpop.f32.mrf.mxu1 }
 0x160   : > { %2471 = vmatmul.msk.bf16.vlgmr.msra.gmra.mxu2 %vm407_vm1, %v2555_v29 }
 0x163   : > { %v738_v34 = vpop.f32.mrf.mxu2 }
 0x164   : > { %v768_v35 = vadd.f32 %v738_v34, %v660_v7  ;;  %1325 = vperm.xlu2 %2597, %v1319_v46   ;;  %v762_v49 = vpop.f32.mrf.mxu3 }
 0x167   : > { %v649_v37 = vpop.f32.mrf.mxu0  ;;  %v719_v38 = vpop.f32.mrf.mxu1 }
 0x168   : > { %v661_v43 = vadd.f32 %v649_v37, %v554_v6  ;;  %v767_v44 = vadd.f32 %v719_v38, %v2903_v63  ;;  %v518_v38 = vadd.f32 %v2844_v25, %v2868_v41 }
 0x16a   : > { %v769_v45 = vadd.f32 %v757_v26, %v661_v43  ;;  %2467 = vmatmul.msk.bf16.vlgmr.msra.gmra.mxu0 %vm407_vm1, %v2555_v29  ;;  %2469 = vmatmul.msk.bf16.vlgmr.msra.gmra.mxu1 %vm407_vm1, %v2555_v29  ;;  %v662_v43 = vadd.f32 %v2911_v8, %v518_v38 }
 0x16b   : > { %v2963_v47 = vpop.f32.mrf.mxu2 }
 0x16c   : > { %1372 = vperm.xlu2 %2597, %v1362_v55   ;;  %v2973_v0 = vpop.f32.mrf.mxu3 }
 0x16f   : > { %v651_v50 = vpop.f32.mrf.mxu0  ;;  %v721_v51 = vpop.f32.mrf.mxu1 }
 0x170   : > { %2472 = vmatmul.msk.bf16.gmra.mxu2 %vm407_vm1, %v2556_v48 }
 0x173   : > { %v743_v52 = vpop.f32.mrf.mxu2 }
 0x174   : > { %v774_v54 = vadd.f32 %v743_v52, %v666_v24  ;;  %v935_v5 = vpop.f32.mrf.mxu3 }
 0x177   : > { %v654_v57 = vpop.f32.mrf.mxu0  ;;  %v724_v61 = vpop.f32.mrf.mxu1 }
 0x178   : > { %v667_v62 = vadd.f32 %v654_v57, %v559_v23  ;;  %v773_v63 = vadd.f32 %v724_v61, %v665_v18 }
 0x17a   : > { %v775_v1 = vadd.f32 %v762_v49, %v667_v62  ;;  %2468 = vmatmul.msk.bf16.gmra.mxu0 %vm407_vm1, %v2556_v48  ;;  %2470 = vmatmul.msk.bf16.gmra.mxu1 %vm407_vm1, %v2556_v48  ;;  %v556_v48 = vadd.f32 %v2921_v13, %v2864_v39  ;;  %vm2212_vm1 = vcmask 257024  }
 0x17b   : > { %v2977_v2 = vpop.f32.mrf.mxu2 }
 0x17c   : > { %v937_v19 = vpop.f32.mrf.mxu3  ;;  %v664_v55 = vadd.f32 %v651_v50, %v556_v48  ;;  %v537_v48 = vadd.f32 %v2919_v12, %v2870_v42 }
 0x17f   : > { %v2979_v3 = vpop.f32.mrf.mxu0  ;;  %v726_v4 = vpop.f32.mrf.mxu1 }
 0x183   : > { %v865_v6 = vpop.f32.mrf.mxu2 }
 0x184   : > { %v877_v7 = vadd.f32 %v865_v6, %v769_v45  ;;  %v940_v24 = vpop.f32.mrf.mxu3  ;;  %v770_v45 = vadd.f32 %v721_v51, %v662_v43 }
 0x187   : > { %v827_v9 = vpop.f32.mrf.mxu0  ;;  %v846_v11 = vpop.f32.mrf.mxu1 }
 0x188   : > { %v875_v15 = vadd.f32 %v827_v9, %v767_v44  ;;  %v2981_v16 = vadd.f32 %v846_v11, %v768_v35 }
 0x18a   : > { %v983_v17 = vadd.f32 %v935_v5, %v875_v15 }
 0x18b   : > { %v867_v18 = vpop.f32.mrf.mxu2 }
 0x18c   : > { %v942_v52 = vpop.f32.mrf.mxu3 }
 0x18f   : > { %v829_v20 = vpop.f32.mrf.mxu0  ;;  %v2983_v21 = vpop.f32.mrf.mxu1 }
 0x190   : > { %v878_v49 = vadd.f32 %v829_v20, %v770_v45 }
 0x192   : > { %v986_v61 = vadd.f32 %v937_v19, %v878_v49 }
 0x193   : > { %v870_v22 = vpop.f32.mrf.mxu2 }
 0x194   : > { %v883_v23 = vadd.f32 %v870_v22, %v775_v1  ;;  %v523_v1 = vadd.f32 %v2866_v40, %v2893_v59  ;;  %v1062_v39 = vpop.f32.mrf.mxu3 }
 0x196   : > { %v668_v5 = vadd.f32 %v2941_v28, %v523_v1 }
 0x197   : > { %v832_v26 = vpop.f32.mrf.mxu0  ;;  %v851_v27 = vpop.f32.mrf.mxu1 }
 0x198   : > { %v881_v29 = vadd.f32 %v832_v26, %v773_v63  ;;  %v2985_v32 = vadd.f32 %v851_v27, %v774_v54  ;;  %v772_v63 = vadd.f32 %v2955_v36, %v664_v55  ;;  %v776_v6 = vadd.f32 %v726_v4, %v668_v5 }
 0x19a   : > { %v989_v33 = vadd.f32 %v940_v24, %v881_v29  ;;  %v880_v41 = vadd.f32 %v867_v18, %v772_v63 }
 0x19b   : > { %v2987_v34 = vpop.f32.mrf.mxu2 }
 0x19c   : > { %v1064_v18 = vpop.f32.mrf.mxu3 }
 0x19f   : > { %v834_v37 = vpop.f32.mrf.mxu0  ;;  %v2989_v35 = vpop.f32.mrf.mxu1 }
 0x1a0   : > { %v884_v9 = vadd.f32 %v834_v37, %v776_v6  ;;  %v3026_v37 = vpop.permute.xlu1 %1340 }
 0x1a3   : > { %v1043_v44 = vpop.f32.mrf.mxu2 }
 0x1a4   : > { %v1091_v46 = vadd.f32 %v1043_v44, %v983_v17  ;;  %v992_v17 = vadd.f32 %v942_v52, %v884_v9  ;;  %v3016_v28 = vpop.f32.mrf.mxu3 }
 0x1a7   : > { %v954_v53 = vpop.f32.mrf.mxu0  ;;  %v973_v54 = vpop.f32.mrf.mxu1 }
 0x1a8   : > { %v2996_v57 = vadd.f32 %v973_v54, %v877_v7  ;;  %v984_v55 = vadd.f32 %v954_v53, %v2981_v16 }
 0x1aa   : > { %v1092_v1 = vadd.f32 %v1062_v39, %v984_v55 }
 0x1ab   : > { %v1045_v62 = vpop.f32.mrf.mxu2 }
 0x1ac   : > { %v2999_v25 = vadd.f32 %v1045_v62, %v986_v61  ;;  %v3020_v27 = vpop.f32.mrf.mxu3  ;;  %v3045_v61 = vpop.permute.xlu1 %1382  ;;  %v663_v62 = vadd.f32 %v2891_v58, %v537_v48  ;;  %v561_v58 = vadd.f32 %v2948_v31, %v2888_v56 }
 0x1af   : > { %v956_v8 = vpop.f32.mrf.mxu0  ;;  %v975_v51 = vpop.f32.mrf.mxu1 }
 0x1b0   : > { %v3003_v13 = vadd.f32 %v975_v51, %v880_v41  ;;  %v771_v51 = vadd.f32 %v2963_v47, %v663_v62 }
 0x1b2   : > { %v879_v42 = vadd.f32 %v2983_v21, %v771_v51  ;;  %v670_v21 = vadd.f32 %v2979_v3, %v561_v58  ;;  %v542_v3 = vadd.f32 %v2946_v30, %v2895_v60 }
 0x1b3   : > { %v1048_v50 = vpop.f32.mrf.mxu2 }
 0x1b4   : > { %v3006_v7 = vadd.f32 %v1048_v50, %v989_v33  ;;  %v3032_v44 = vpop.f32.mrf.mxu3  ;;  %v3054_v50 = vpop.permute.xlu0 %1335  ;;  %v987_v16 = vadd.f32 %v956_v8, %v879_v42  ;;  %v3070_v8 = vld [vmem:[%s3433_s7] sm:$0x7]  ;;  %v669_v60 = vadd.f32 %v2924_v14, %v542_v3 }
 0x1b5   : > { %v3063_v39 = vpop.permute.xlu1 %1367  ;;  %v3075_v48 = vperm.slane %v3070_v8, 0  ;;  %v3080_v55 = vperm.slane %v3070_v8, 1 }
 0x1b6   : > { %v3038_v49 = vpop.permute.xlu2 %1377 }
 0x1b7   : > { %v959_v11 = vpop.f32.mrf.mxu0  ;;  %v978_v36 = vpop.f32.mrf.mxu1 }
 0x1b8   : > { %v3008_v15 = vadd.f32 %v978_v36, %v883_v23 }
 0x1bb   : > { %v1050_v19 = vpop.f32.mrf.mxu2 }
 0x1bc   : > { %v3010_v20 = vadd.f32 %v1050_v19, %v992_v17  ;;  %v3048_v63 = vpop.f32.mrf.mxu3  ;;  %v3087_v30 = vpop.permute.xlu0 %1330 }
 0x1be   : > { %v3058_v17 = vpop.permute.xlu2 %1325 }
 0x1bf   : > { %v3012_v40 = vpop.f32.mrf.mxu0  ;;  %v3014_v59 = vpop.f32.mrf.mxu1 }
 0x1c3   : > { %v1170_v22 = vpop.f32.mrf.mxu2 }
 0x1c4   : > { %v1200_v12 = vadd.f32 %v1170_v22, %v1092_v1  ;;  %v1095_v22 = vadd.f32 %v1064_v18, %v987_v16  ;;  %v990_v18 = vadd.f32 %v959_v11, %v2985_v32  ;;  %v777_v11 = vadd.f32 %v2977_v2, %v669_v60 }
 0x1c7   : > { %v3018_v4 = vpop.f32.mrf.mxu0  ;;  %v1151_v24 = vpop.f32.mrf.mxu1 }
 0x1c8   : > { %v1199_v5 = vadd.f32 %v1151_v24, %v1091_v46  ;;  %v1194_v24 = vpop.f32.mrf.mxu3 }
 0x1cb   : > { %v1172_v26 = vpop.f32.mrf.mxu2 }
 0x1cc   : > { %v1203_v62 = vadd.f32 %v1172_v26, %v1095_v22 }
 0x1cf   : > { %v3022_v23 = vpop.f32.mrf.mxu0  ;;  %v1153_v29 = vpop.f32.mrf.mxu1 }
 0x1d0   : > { %v1202_v51 = vadd.f32 %v1153_v29, %v2999_v25 }
 0x1d3   : > { %v3024_v33 = vpop.f32.mrf.mxu2 }
 0x1d7   : > { %v3028_v38 = vpop.f32.mrf.mxu0  ;;  %v3030_v43 = vpop.f32.mrf.mxu1 }
 0x1d8   : > { %v1205_v2 = vadd.f32 %v3030_v43, %v3006_v7 }
 0x1db   : > { %v3034_v45 = vpop.f32.mrf.mxu2 }
 0x1df   : > { %v3040_v52 = vpop.f32.mrf.mxu0  ;;  %v3042_v54 = vpop.f32.mrf.mxu1 }
 0x1e3   : > { %v3050_v41 = vpop.f32.mrf.mxu2 }
 0x1e7   : > { %v1259_v6 = vpop.f32.mrf.mxu0  ;;  %v1278_v9 = vpop.f32.mrf.mxu1 }
 0x1e8   : > { %v1307_v53 = vadd.f32 %v1259_v6, %v1199_v5  ;;  %v1308_v36 = vadd.f32 %v1278_v9, %v1200_v12  ;;  %v778_v6 = vadd.f32 %v2973_v0, %v670_v21  ;;  %v1098_v0 = vadd.f32 %v3016_v28, %v990_v18 }
 0x1e9   : > { %v1093_v18 = vadd.f32 %v3018_v4, %v2996_v57  ;;  %v1208_v4 = vadd.f32 %v3042_v54, %v3010_v20  ;;  %v3130_v54 = vperm.slane %v3070_v8, 2 }
 0x1ea   : > { %v1343_v19 = vadd.f32 %v3058_v17, %v1307_v53  ;;  %v1344_v47 = vadd.f32 %v3058_v17, %v1308_v36  ;;  %v886_v25 = vadd.f32 %v2987_v34, %v778_v6  ;;  %v3095_v36 = vpop.permute.xlu2 %1372  ;;  %v885_v34 = vadd.f32 %v2989_v35, %v777_v11 }
 0x1eb   : > { %v3065_v46 = vpop.f32.mrf.mxu2  ;;  %v1206_v22 = vadd.f32 %v3024_v33, %v1098_v0  ;;  %v1099_v35 = vadd.f32 %v3028_v38, %v3008_v15 }
 0x1ec   : > { %v1385_v56 = vadd.f32 %v3063_v39, %v1343_v19  ;;  %v1386_v31 = vadd.f32 %v3063_v39, %v1344_v47  ;;  %v994_v14 = vadd.f32 %v3014_v59, %v886_v25  ;;  %v993_v59 = vadd.f32 %v3012_v40, %v885_v34 }
 0x1ee   : > { %v1397_v1 = vmax.f32 %v1385_v56, 0.0  ;;  %v1398_v42 = vmax.f32 %v1386_v31, 0.0  ;;  %v1102_v28 = vadd.f32 %v3040_v52, %v994_v14  ;;  %v1196_v56 = vpop.f32.mrf.mxu3  ;;  %v1101_v40 = vadd.f32 %v3020_v27, %v993_v59 }
 0x1ef   : > { %v1261_v12 = vpop.f32.mrf.mxu0  ;;  %v1280_v5 = vpop.f32.mrf.mxu1 }
 0x1f0   : > { %v1310_v9 = vadd.f32 %v1261_v12, %v1202_v51  ;;  %v1311_v16 = vadd.f32 %v1280_v5, %v1203_v62  ;;  %v1424_v53 = vmul.f32 %v3075_v48, %v1397_v1  ;;  %v1425_v26 = vmul.f32 %v3080_v55, %v1398_v42 }
 0x1f1   : > { %v1210_v43 = vadd.f32 %v1196_v56, %v1102_v28  ;;  %v1209_v57 = vadd.f32 %v3034_v45, %v1101_v40 }
 0x1f2   : > { %v1346_v29 = vadd.f32 %v3087_v30, %v1310_v9  ;;  %v1347_v32 = vadd.f32 %v3087_v30, %v1311_v16  ;;  %v1436_v19 = vpack.c.bf16 %v1425_v26, %v1424_v53  ;;  %v1207_v9 = vadd.f32 %v1194_v24, %v1099_v35 }
 0x1f3   : > { %v1302_v58 = vpop.f32.mrf.mxu2  ;;  %v1201_v53 = vadd.f32 %v3032_v44, %v1093_v18  ;;  %v1096_v24 = vadd.f32 %v3022_v23, %v3003_v13 }
 0x1f4   : > { %v1388_v47 = vadd.f32 %v3095_v36, %v1346_v29  ;;  %v1389_v21 = vadd.f32 %v3095_v36, %v1347_v32  ;;  %1452 = vrot.lane.b32.xlu2 %v1436_v19, %s2635_s15  ;;  %v1315_v60 = vadd.f32 %v1302_v58, %v1207_v9 }
 0x1f5   : > { %v1309_v29 = vadd.f32 %v3050_v41, %v1201_v53  ;;  %v1204_v41 = vadd.f32 %v3048_v63, %v1096_v24 }
 0x1f6   : > { %v1400_v31 = vmax.f32 %v1388_v47, 0.0  ;;  %v1401_v3 = vmax.f32 %v1389_v21, 0.0  ;;  %v1351_v58 = vadd.f32 %v3054_v50, %v1315_v60 }
 0x1f7   : > { %v1264_v62 = vpop.f32.mrf.mxu0  ;;  %v1283_v51 = vpop.f32.mrf.mxu1  ;;  %v1345_v47 = vadd.f32 %v3058_v17, %v1309_v29  ;;  %v1312_v8 = vadd.f32 %v3065_v46, %v1204_v41 }
 0x1f8   : > { %v1313_v1 = vadd.f32 %v1264_v62, %v1205_v2  ;;  %v1314_v33 = vadd.f32 %v1283_v51, %v1206_v22  ;;  %v1427_v42 = vmul.f32 %v3075_v48, %v1400_v31  ;;  %v1428_v7 = vmul.f32 %v3080_v55, %v1401_v3 }
 0x1f9   : > { %v1387_v63 = vadd.f32 %v3063_v39, %v1345_v47 }
 0x1fa   : > { %v1349_v52 = vadd.f32 %v3054_v50, %v1313_v1  ;;  %v1350_v12 = vadd.f32 %v3054_v50, %v1314_v33  ;;  %v1438_v6 = vpack.c.bf16 %v1428_v7, %v1427_v42  ;;  %v1393_v50 = vadd.f32 %v3038_v49, %v1351_v58 }
 0x1fb   : > { %v1304_v5 = vpop.f32.mrf.mxu2  ;;  %v1399_v46 = vmax.f32 %v1387_v63, 0.0 }
 0x1fc   : > { %v1391_v15 = vadd.f32 %v3038_v49, %v1349_v52  ;;  %v1392_v38 = vadd.f32 %v3038_v49, %v1350_v12  ;;  %v1318_v16 = vadd.f32 %v1304_v5, %v1210_v43  ;;  %v1405_v3 = vmax.f32 %v1393_v50, 0.0  ;;  %v3282_v50 = vld [vmem:[%s3430_s4] sm:$0x3] }
 0x1fd   : > { %v1426_v39 = vmul.f32 %v3130_v54, %v1399_v46 }
 0x1fe   : > { %v1403_v26 = vmax.f32 %v1391_v15, 0.0  ;;  %v1404_v25 = vmax.f32 %v1392_v38, 0.0  ;;  %v1354_v27 = vadd.f32 %v3026_v37, %v1318_v16  ;;  %v1432_v62 = vmul.f32 %v3130_v54, %v1405_v3  ;;  %v2536_v3 = vld [vmem:[%s3432_s6 + $0x4] sm:$0xf] }
 0x1ff   : > { %v1266_v32 = vpop.f32.mrf.mxu0  ;;  %v1285_v11 = vpop.f32.mrf.mxu1  ;;  %v1437_v1 = vpack.c.bf16 %v1426_v39, %v1426_v39 }
 0x200   : > { %v1396_v0 = vadd.f32 %v3045_v61, %v1354_v27  ;;  %v1316_v44 = vadd.f32 %v1266_v32, %v1208_v4  ;;  %v1317_v19 = vadd.f32 %v1285_v11, %v1209_v57  ;;  %v1430_v45 = vmul.f32 %v3075_v48, %v1403_v26 }
 0x201   : > { %v1431_v20 = vmul.f32 %v3080_v55, %v1404_v25  ;;  %v1441_v35 = vpack.c.bf16 %v1432_v62, %v1432_v62  ;;  %v2134_v62 = vld [vmem:[%s3432_s6] sm:$0xf] }
 0x202   : > { %v1408_v14 = vmax.f32 %v1396_v0, 0.0  ;;  %v1352_v13 = vadd.f32 %v3026_v37, %v1316_v44  ;;  %v1353_v23 = vadd.f32 %v3026_v37, %v1317_v19 }
 0x203   : > { %v1440_v21 = vpack.c.bf16 %v1431_v20, %v1430_v45 }
 0x204   : > { %v1394_v34 = vadd.f32 %v3045_v61, %v1352_v13  ;;  %v1395_v22 = vadd.f32 %v3045_v61, %v1353_v23  ;;  %v1435_v2 = vmul.f32 %v3130_v54, %v1408_v14  ;;  %v1348_v61 = vadd.f32 %v3087_v30, %v1312_v8 }
 0x205   : > { %1460 = vrot.lane.b32.xlu0 %v1440_v21, %s2635_s15 }
 0x206   : > { %v1406_v28 = vmax.f32 %v1394_v34, 0.0  ;;  %v1407_v56 = vmax.f32 %v1395_v22, 0.0  ;;  %v1443_v37 = vpack.c.bf16 %v1435_v2, %v1435_v2  ;;  %v1390_v49 = vadd.f32 %v3095_v36, %v1348_v61  ;;  %v2477_v61 = vld [vmem:[%s3430_s4 + $0x2] sm:$0x3] }
 0x208   : > { %1466 = vrot.lane.b32.xlu2 %v1443_v37, %s2635_s15  ;;  %v1433_v17 = vmul.f32 %v3075_v48, %v1406_v28  ;;  %v1434_v31 = vmul.f32 %v3080_v55, %v1407_v56  ;;  %v1402_v51 = vmax.f32 %v1390_v49, 0.0  ;;  %v2145_v49 = vmul.f32 %v2536_v3, %v2916_v10 }
 0x20a   : > { %v1442_v59 = vpack.c.bf16 %v1434_v31, %v1433_v17  ;;  %v1429_v30 = vmul.f32 %v3130_v54, %v1402_v51 }
 0x20c   : > { %1464 = vrot.lane.b32.xlu1 %v1442_v59, %s2635_s15  ;;  %v1439_v33 = vpack.c.bf16 %v1429_v30, %v1429_v30 }
 0x20d   : > { %1456 = vrot.lane.b32.xlu0 %v1438_v6, %s2635_s15 }
 0x214   : > { %1462 = vrot.lane.b32.xlu1 %v1441_v35, %s2635_s15 }
 0x215   : > { %1454 = vrot.lane.b32.xlu0 %v1437_v1, %s2635_s15 }
 0x21c   : > { %1458 = vrot.lane.b32.xlu1 %v1439_v33, %s2635_s15 }
 0x24e   : > { %v1453_v36 = vpop.permute.xlu2 %1452 }
 0x24f   : > { %v1468_v18 = vrot.slane %v1453_v36, 4 }
 0x251   : > { %v1473_v7 = vsel %vm1472_vm12, %v1468_v18, %v1453_v36 }
 0x252   : > { %1492 = vst.msk [vmem:[#allocation2] sm:$0xff] %vm3157_vm13, %v1473_v7 }
 0x259   : > { %v2480_v32 = vld [vmem:[#allocation2] sm:$0xf]  ;;  %v2557_v20 = vld [vmem:[#allocation2 + $0x4] sm:$0xf] }
 0x262   : > { %v1467_v9 = vpop.permute.xlu2 %1466 }
 0x277   : > { %v1461_v43 = vpop.permute.xlu0 %1460 }
 0x278   : > { %v1470_v52 = vrot.slane %v1461_v43, 4 }
 0x27a   : > { %v1477_v12 = vsel %vm1472_vm12, %v1470_v52, %v1461_v43 }
 0x27b   : > { %1497 = vst.msk [vmem:[#allocation2 + $0x18] sm:$0xff] %vm3157_vm13, %v1477_v12 }
 0x27e   : > { %v1465_v40 = vpop.permute.xlu1 %1464 }
 0x27f   : > { %v1471_v5 = vrot.slane %v1465_v40, 4  ;;  %v1457_v6 = vpop.permute.xlu0 %1456 }
 0x280   : > { %v1469_v15 = vrot.slane %v1457_v6, 4 }
 0x281   : > { %v1479_v38 = vsel %vm1472_vm12, %v1471_v5, %v1465_v40  ;;  %v1480_v16 = vsel %vm1472_vm12, %v1471_v5, %v1467_v9  ;;  %v2508_v40 = vld [vmem:[%s3430_s4 + $0x4] sm:$0x3] }
 0x282   : > { %1499 = vst.msk [vmem:[#allocation2 + $0x24] sm:$0xff] %vm3157_vm13, %v1479_v38  ;;  %v1475_v53 = vsel %vm1472_vm12, %v1469_v15, %v1457_v6  ;;  %v2560_v26 = vld [vmem:[#allocation2 + $0x1c] sm:$0xf]  ;;  %v2492_v25 = vld [vmem:[#allocation2 + $0x18] sm:$0xf] }
 0x283   : > { %1495 = vst.msk [vmem:[#allocation2 + $0xc] sm:$0xff] %vm3157_vm13, %v1475_v53 }
 0x284   : > { %1500 = vst.msk [vmem:[#allocation2 + $0x2c] sm:$0xf] %vm1493_vm14, %v1480_v16 }
 0x286   : > { %v1463_v57 = vpop.permute.xlu1 %1462 }
 0x287   : > { %v1478_v4 = vsel %vm1472_vm12, %v1470_v52, %v1463_v57  ;;  %v1455_v60 = vpop.permute.xlu0 %1454 }
 0x288   : > { %1498 = vst.msk [vmem:[#allocation2 + $0x20] sm:$0xf] %vm1493_vm14, %v1478_v4  ;;  %v1474_v27 = vsel %vm1472_vm12, %v1468_v18, %v1455_v60 }
 0x289   : > { %v2494_v24 = vld [vmem:[#allocation2 + $0x24] sm:$0xf0]  ;;  %v2561_v29 = vld [vmem:[#allocation2 + $0x20] sm:$0xf0]  ;;  %1494 = vst.msk [vmem:[#allocation2 + $0x8] sm:$0xf] %vm1493_vm14, %v1474_v27 }
 0x28a   : > { %v3179_v11 = vor.u32 %v2561_v29, %v2492_v25  ;;  %v3181_v0 = vor.u32 %v2560_v26, %v2494_v24  ;;  %v2558_v44 = vld [vmem:[#allocation2 + $0x8] sm:$0xf0]  ;;  %v2482_v19 = vld [vmem:[#allocation2 + $0xc] sm:$0xf0]  ;;  %v2512_v25 = vld [vmem:[%s3430_s4 + $0x6] sm:$0x3] }
 0x28b   : > { %v3183_v45 = vor.u32 %v2558_v44, %v2480_v32  ;;  %v3191_v58 = vor.u32 %v2557_v20, %v2482_v19  ;;  %v2562_v34 = vld [vmem:[#allocation2 + $0x28] sm:$0xf0]  ;;  %v2516_v20 = vld [vmem:[%s3430_s4 + $0x8] sm:$0x3] }
 0x28c   : > { %1618 = vmatpush.bf16.msrb.mxu1 %v3179_v11  ;;  %1631 = vmatpush.bf16.msrb.mxu2 %v3181_v0 }
 0x28d   : > { %1546 = vrot.lane.b32.xlu0 %v3181_v0, %s2626_s22  ;;  %1544 = vrot.lane.b32.xlu2 %v3179_v11, %s2626_s22 }
 0x28e   : > { %1538 = vrot.lane.b32.xlu1 %v3183_v45, %s2626_s22  ;;  %v1459_v14 = vpop.permute.xlu1 %1458 }
 0x28f   : > { %v1476_v13 = vsel %vm1472_vm12, %v1469_v15, %v1459_v14  ;;  %v2500_v47 = vld [vmem:[#allocation2 + $0x20] sm:$0xf] }
 0x290   : > { %1496 = vst.msk [vmem:[#allocation2 + $0x14] sm:$0xf] %vm1493_vm14, %v1476_v13  ;;  %1619 = vmatpush.bf16.msrb.mxu1 %v3183_v45  ;;  %1632 = vmatpush.bf16.msrb.mxu2 %v3191_v58  ;;  %v2488_v23 = vld [vmem:[#allocation2 + $0x8] sm:$0xf]  ;;  %v3207_v22 = vor.u32 %v2562_v34, %v2500_v47 }
 0x293   : > { %2506 = vmatmul.msk.bf16.vlgmr.msrb.gmra.mxu2 %vm1560_vm15, %v3282_v50  ;;  %2505 = vmatmul.msk.bf16.vlgmr.msrb.gmra.mxu1 %vm1560_vm15, %v3282_v50 }
 0x295   : > { %1661 = vrot.lane.b32.xlu0 %v3181_v0, %s2627_s23  ;;  %1540 = vrot.lane.b32.xlu2 %v3191_v58, %s2626_s22 }
 0x297   : > { %v2559_v41 = vld [vmem:[#allocation2 + $0x10] sm:$0xf0] }
 0x298   : > { %v3203_v21 = vor.u32 %v2559_v41, %v2488_v23 }
 0x29a   : > { %1542 = vrot.lane.b32.xlu1 %v3203_v21, %s2626_s22 }
 0x29d   : > { %1655 = vrot.lane.b32.xlu2 %v3191_v58, %s2627_s23  ;;  %1548 = vrot.lane.b32.xlu0 %v3207_v22, %s2626_s22 }
 0x2a2   : > { %1653 = vrot.lane.b32.xlu1 %v3183_v45, %s2627_s23 }
 0x2a5   : > { %1659 = vrot.lane.b32.xlu2 %v3179_v11, %s2627_s23  ;;  %1728 = vrot.lane.b32.xlu0 %v3179_v11, %s2628_s24 }
 0x2aa   : > { %1730 = vrot.lane.b32.xlu1 %v3181_v0, %s2628_s24 }
 0x2ad   : > { %1657 = vrot.lane.b32.xlu2 %v3203_v21, %s2627_s23  ;;  %1722 = vrot.lane.b32.xlu0 %v3183_v45, %s2628_s24 }
 0x2b2   : > { %1724 = vrot.lane.b32.xlu1 %v3191_v58, %s2628_s24 }
 0x2b5   : > { %1799 = vrot.lane.b32.xlu2 %v3181_v0, %s2629_s25  ;;  %1795 = vrot.lane.b32.xlu0 %v3203_v21, %s2629_s25 }
 0x2ba   : > { %1726 = vrot.lane.b32.xlu1 %v3203_v21, %s2628_s24 }
 0x2bd   : > { %1663 = vrot.lane.b32.xlu2 %v3207_v22, %s2627_s23  ;;  %1868 = vrot.lane.b32.xlu0 %v3181_v0, %s2630_s26 }
 0x2c2   : > { %1797 = vrot.lane.b32.xlu1 %v3179_v11, %s2629_s25 }
 0x2c5   : > { %1793 = vrot.lane.b32.xlu2 %v3191_v58, %s2629_s25  ;;  %1732 = vrot.lane.b32.xlu0 %v3207_v22, %s2628_s24 }
 0x2ca   : > { %1791 = vrot.lane.b32.xlu1 %v3183_v45, %s2629_s25 }
 0x2cd   : > { %1862 = vrot.lane.b32.xlu2 %v3191_v58, %s2630_s26  ;;  %1801 = vrot.lane.b32.xlu0 %v3207_v22, %s2629_s25 }
 0x2d2   : > { %1864 = vrot.lane.b32.xlu1 %v3203_v21, %s2630_s26 }
 0x2d5   : > { %1937 = vrot.lane.b32.xlu2 %v3181_v0, %s2631_s29  ;;  %1866 = vrot.lane.b32.xlu0 %v3179_v11, %s2630_s26 }
 0x2da   : > { %1935 = vrot.lane.b32.xlu1 %v3179_v11, %s2631_s29 }
 0x2dd   : > { %1870 = vrot.lane.b32.xlu2 %v3207_v22, %s2630_s26  ;;  %1860 = vrot.lane.b32.xlu0 %v3183_v45, %s2630_s26 }
 0x2e2   : > { %1929 = vrot.lane.b32.xlu1 %v3183_v45, %s2631_s29 }
 0x2e5   : > { %1931 = vrot.lane.b32.xlu2 %v3191_v58, %s2631_s29  ;;  %2004 = vrot.lane.b32.xlu0 %v3179_v11, %s2632_s30 }
 0x2e7   : > { %v1545_v2 = vpop.permute.xlu2 %1544 }
 0x2ea   : > { %2006 = vrot.lane.b32.xlu1 %v3181_v0, %s2632_s30 }
 0x2ed   : > { %1939 = vrot.lane.b32.xlu2 %v3207_v22, %s2631_s29  ;;  %1998 = vrot.lane.b32.xlu0 %v3183_v45, %s2632_s30 }
 0x2ef   : > { %v1541_v8 = vpop.permute.xlu2 %1540 }
 0x2f2   : > { %2000 = vrot.lane.b32.xlu1 %v3191_v58, %s2632_s30 }
 0x2f5   : > { %1933 = vrot.lane.b32.xlu2 %v3203_v21, %s2631_s29  ;;  %2008 = vrot.lane.b32.xlu0 %v3207_v22, %s2632_s30 }
 0x2f7   : > { %v1656_v28 = vpop.permute.xlu2 %1655 }
 0x2fa   : > { %2002 = vrot.lane.b32.xlu1 %v3203_v21, %s2632_s30 }
 0x2fd   : > { %2075 = vrot.lane.b32.xlu2 %v3181_v0, %s2633_s9  ;;  %2077 = vrot.lane.b32.xlu0 %v3207_v22, %s2633_s9 }
 0x2ff   : > { %v1547_v56 = vpop.permute.xlu0 %1546  ;;  %v1660_v37 = vpop.permute.xlu2 %1659 }
 0x300   : > { %v1552_v63 = vsel %vm404_vm3, %v1545_v2, %v1547_v56  ;;  %v1539_v17 = vpop.permute.xlu1 %1538 }
 0x301   : > { %1570 = vmatpush.bf16.msra.mxu3 %v1552_v63  ;;  %v1550_v31 = vsel %vm404_vm3, %v1539_v17, %v1541_v8 }
 0x302   : > { %2073 = vrot.lane.b32.xlu1 %v3179_v11, %s2633_s9 }
 0x305   : > { %2069 = vrot.lane.b32.xlu2 %v3191_v58, %s2633_s9  ;;  %2071 = vrot.lane.b32.xlu0 %v3203_v21, %s2633_s9 }
 0x306   : > { %1571 = vmatpush.bf16.msra.mxu3 %v1550_v31 }
 0x307   : > { %v1662_v59 = vpop.permute.xlu0 %1661  ;;  %v1658_v46 = vpop.permute.xlu2 %1657 }
 0x308   : > { %v1667_v30 = vsel %vm584_vm2, %v1660_v37, %v1662_v59  ;;  %v1666_v12 = vsel %vm584_vm2, %v1656_v28, %v1658_v46 }
 0x309   : > { %2502 = vmatmul.msk.bf16.vlgmr.msra.gmra.mxu3 %vm1560_vm15, %v2477_v61 }
 0x30a   : > { %2067 = vrot.lane.b32.xlu1 %v3183_v45, %s2633_s9 }
 0x30c   : > { %v1543_v39 = vpop.permute.xlu1 %1542 }
 0x30d   : > { %2137 = vperm.xlu2 %2597, %v2134_v62   ;;  %2148 = vperm.xlu0 %2595, %v2145_v49   ;;  %v1551_v33 = vsel %vm404_vm3, %v1541_v8, %v1543_v39 }
 0x30f   : > { %v1549_v51 = vpop.permute.xlu0 %1548  ;;  %v3315_v35 = vpop.permute.xlu2 %1799 }
 0x310   : > { %v1553_v1 = vsel %vm404_vm3, %v1547_v56, %v1549_v51  ;;  %1596 = vmatpush.bf16.msrb.mxu0 %v1549_v51 }
 0x311   : > { %1583 = vmatpush.bf16.msrb.mxu3 %v1553_v1 }
 0x314   : > { %1597 = vmatpush.bf16.msrb.mxu0 %v1543_v39  ;;  %v1654_v10 = vpop.permute.xlu1 %1653  ;;  %v2528_v39 = vld [vmem:[%s3430_s4 + $0xe] sm:$0x3] }
 0x315   : > { %1584 = vmatpush.bf16.msrb.mxu3 %v1551_v33  ;;  %v1665_v7 = vsel %vm584_vm2, %v1654_v10, %v1656_v28 }
 0x317   : > { %v1729_v36 = vpop.permute.xlu0 %1728  ;;  %v1664_v42 = vpop.permute.xlu2 %1663  ;;  %2504 = vmatmul.msk.bf16.vlgmr.msrb.gmra.mxu0 %vm1560_vm15, %v2477_v61 }
 0x318   : > { %1684 = vmatpush.bf16.msra.mxu0 %v1667_v30  ;;  %v1668_v18 = vsel %vm584_vm2, %v1662_v59, %v1664_v42  ;;  %1710 = vmatpush.bf16.msra.mxu2 %v1664_v42  ;;  %v2524_v59 = vld [vmem:[%s3430_s4 + $0xc] sm:$0x3] }
 0x319   : > { %1644 = vmatpush.bf16.msra.mxu3 %v3207_v22  ;;  %1697 = vmatpush.bf16.msra.mxu1 %v1668_v18  ;;  %v1621_v18 = vpop.f32.mrf.mxu1 }
 0x31a   : > { %2503 = vmatmul.msk.bf16.vlgmr.msrb.gmra.mxu3 %vm1560_vm15, %v2477_v61 }
 0x31c   : > { %1685 = vmatpush.bf16.msra.mxu0 %v1665_v7  ;;  %1711 = vmatpush.bf16.msra.mxu2 %v1658_v46  ;;  %v1731_v43 = vpop.permute.xlu1 %1730 }
 0x31d   : > { %1645 = vmatpush.bf16.msra.mxu3 %v3203_v21  ;;  %v1736_v52 = vsel %vm692_vm4, %v1729_v36, %v1731_v43  ;;  %1698 = vmatpush.bf16.msra.mxu1 %v1666_v12 }
 0x31f   : > { %v1723_v5 = vpop.permute.xlu0 %1722  ;;  %v1794_v6 = vpop.permute.xlu2 %1793  ;;  %2511 = vmatmul.msk.bf16.vlgmr.msra.gmra.mxu2 %vm1560_vm15, %v2508_v40 }
 0x320   : > { %2510 = vmatmul.msk.bf16.vlgmr.msra.gmra.mxu1 %vm1560_vm15, %v2508_v40 }
 0x321   : > { %1753 = vmatpush.bf16.msrb.mxu3 %v1736_v52 }
 0x324   : > { %v1725_v9 = vpop.permute.xlu1 %1724 }
 0x325   : > { %v1734_v15 = vsel %vm692_vm4, %v1723_v5, %v1725_v9 }
 0x326   : > { %1754 = vmatpush.bf16.msrb.mxu3 %v1734_v15  ;;  %v1634_v15 = vpop.f32.mrf.mxu2 }
 0x327   : > { %v1796_v38 = vpop.permute.xlu0 %1795  ;;  %v1863_v16 = vpop.permute.xlu2 %1862  ;;  %2509 = vmatmul.msk.bf16.vlgmr.msra.gmra.mxu0 %vm1560_vm15, %v2508_v40  ;;  %v2532_v40 = vld [vmem:[%s3430_s4 + $0x10] sm:$0x3] }
 0x328   : > { %v1804_v13 = vsel %vm800_vm5, %v1794_v6, %v1796_v38 }
 0x32a   : > { %2507 = vmatmul.msk.bf16.vlgmr.msra.gmra.mxu3 %vm1560_vm15, %v3282_v50  ;;  %v2520_v50 = vld [vmem:[%s3430_s4 + $0xa] sm:$0x3] }
 0x32c   : > { %v1727_v53 = vpop.permute.xlu1 %1726 }
 0x32d   : > { %v1735_v11 = vsel %vm692_vm4, %v1725_v9, %v1727_v53 }
 0x32f   : > { %v1869_v57 = vpop.permute.xlu0 %1868  ;;  %v1938_v4 = vpop.permute.xlu2 %1937 }
 0x334   : > { %v1798_v60 = vpop.permute.xlu1 %1797 }
 0x335   : > { %v1805_v26 = vsel %vm800_vm5, %v1798_v60, %v3315_v35 }
 0x336   : > { %1822 = vmatpush.bf16.msrb.mxu2 %v1805_v26 }
 0x337   : > { %v1733_v27 = vpop.permute.xlu0 %1732  ;;  %v1871_v24 = vpop.permute.xlu2 %1870 }
 0x338   : > { %v1737_v29 = vsel %vm692_vm4, %v1731_v43, %v1733_v27  ;;  %1779 = vmatpush.bf16.msrb.mxu1 %v1733_v27  ;;  %v1875_v44 = vsel %vm908_vm6, %v1869_v57, %v1871_v24 }
 0x339   : > { %1766 = vmatpush.bf16.msrb.mxu0 %v1737_v29 }
 0x33a   : > { %2513 = vmatmul.msk.bf16.vlgmr.msrb.gmra.mxu3 %vm1560_vm15, %v2512_v25 }
 0x33c   : > { %1780 = vmatpush.bf16.msrb.mxu1 %v1727_v53  ;;  %v1792_v32 = vpop.permute.xlu1 %1791 }
 0x33d   : > { %1767 = vmatpush.bf16.msrb.mxu0 %v1735_v11  ;;  %v1803_v0 = vsel %vm800_vm5, %v1792_v32, %v1794_v6  ;;  %v1623_v6 = vpop.f32.mrf.mxu1 }
 0x33e   : > { %1823 = vmatpush.bf16.msrb.mxu2 %v1803_v0 }
 0x33f   : > { %v1802_v19 = vpop.permute.xlu0 %1801  ;;  %v1932_v45 = vpop.permute.xlu2 %1931  ;;  %2515 = vmatmul.msk.bf16.vlgmr.msrb.gmra.mxu1 %vm1560_vm15, %v2512_v25 }
 0x340   : > { %v1806_v58 = vsel %vm800_vm5, %v3315_v35, %v1802_v19  ;;  %2514 = vmatmul.msk.bf16.vlgmr.msrb.gmra.mxu0 %vm1560_vm15, %v2512_v25 }
 0x341   : > { %1848 = vmatpush.bf16.msra.mxu0 %v1802_v19  ;;  %1835 = vmatpush.bf16.msra.mxu3 %v1806_v58 }
 0x342   : > { %1904 = vmatpush.bf16.msra.mxu2 %v1875_v44 }
 0x343   : > { %2517 = vmatmul.msk.bf16.vlgmr.msrb.gmra.mxu2 %vm1560_vm15, %v2516_v20 }
 0x344   : > { %v1865_v14 = vpop.permute.xlu1 %1864 }
 0x345   : > { %1849 = vmatpush.bf16.msra.mxu0 %v1796_v38  ;;  %1836 = vmatpush.bf16.msra.mxu3 %v1804_v13  ;;  %v1873_v23 = vsel %vm908_vm6, %v1863_v16, %v1865_v14 }
 0x346   : > { %1905 = vmatpush.bf16.msra.mxu2 %v1873_v23 }
 0x347   : > { %v1867_v41 = vpop.permute.xlu0 %1866  ;;  %v1940_v47 = vpop.permute.xlu2 %1939 }
 0x348   : > { %v1874_v21 = vsel %vm908_vm6, %v1867_v41, %v1869_v57  ;;  %v1944_v56 = vsel %vm1016_vm7, %v1938_v4, %v1940_v47 }
 0x349   : > { %1917 = vmatpush.bf16.msrb.mxu3 %v1871_v24  ;;  %1891 = vmatpush.bf16.msra.mxu1 %v1874_v21 }
 0x34a   : > { %1986 = vmatpush.bf16.msrb.mxu2 %v1940_v47  ;;  %2518 = vmatmul.msk.bf16.vlgmr.msra.gmra.mxu3 %vm1560_vm15, %v2516_v20 }
 0x34c   : > { %v1936_v34 = vpop.permute.xlu1 %1935 }
 0x34d   : > { %1918 = vmatpush.bf16.msrb.mxu3 %v1865_v14  ;;  %v1943_v22 = vsel %vm1016_vm7, %v1936_v34, %v1938_v4 }
 0x34e   : > { %1960 = vmatpush.bf16.msrb.mxu0 %v1943_v22 }
 0x34f   : > { %v1861_v2 = vpop.permute.xlu0 %1860  ;;  %v1934_v8 = vpop.permute.xlu2 %1933 }
 0x350   : > { %2519 = vmatmul.msk.bf16.vlgmr.msra.gmra.mxu0 %vm1560_vm15, %v2516_v20  ;;  %1987 = vmatpush.bf16.msrb.mxu2 %v1934_v8  ;;  %v1872_v28 = vsel %vm908_vm6, %v1861_v2, %v1863_v16  ;;  %v1942_v63 = vsel %vm1016_vm7, %v1932_v45, %v1934_v8  ;;  %v1636_v16 = vpop.f32.mrf.mxu2 }
 0x351   : > { %1892 = vmatpush.bf16.msra.mxu1 %v1872_v28 }
 0x353   : > { %2522 = vmatmul.msk.bf16.vlgmr.msra.gmra.mxu2 %vm1560_vm15, %v2520_v50 }
 0x354   : > { %2521 = vmatmul.msk.bf16.vlgmr.msra.gmra.mxu1 %vm1560_vm15, %v2520_v50  ;;  %v1930_v37 = vpop.permute.xlu1 %1929 }
 0x355   : > { %1973 = vmatpush.bf16.msrb.mxu1 %v1944_v56  ;;  %v1941_v17 = vsel %vm1016_vm7, %v1930_v37, %v1932_v45 }
 0x356   : > { %1961 = vmatpush.bf16.msrb.mxu0 %v1941_v17 }
 0x357   : > { %v2005_v31 = vpop.permute.xlu0 %2004  ;;  %v2076_v30 = vpop.permute.xlu2 %2075 }
 0x359   : > { %1974 = vmatpush.bf16.msrb.mxu1 %v1942_v63 }
 0x35a   : > { %2523 = vmatmul.msk.bf16.vlgmr.msrb.gmra.mxu3 %vm1560_vm15, %v2520_v50 }
 0x35c   : > { %v2007_v61 = vpop.permute.xlu1 %2006 }
 0x35d   : > { %v2012_v3 = vsel %vm1124_vm8, %v2005_v31, %v2007_v61 }
 0x35e   : > { %2029 = vmatpush.bf16.msra.mxu3 %v2012_v3 }
 0x35f   : > { %v1999_v46 = vpop.permute.xlu0 %1998  ;;  %v2070_v43 = vpop.permute.xlu2 %2069 }
 0x360   : > { %2525 = vmatmul.msk.bf16.vlgmr.msrb.gmra.mxu0 %vm1560_vm15, %v2524_v59 }
 0x363   : > { %2527 = vmatmul.msk.bf16.vlgmr.msrb.gmra.mxu2 %vm1560_vm15, %v2524_v59 }
 0x364   : > { %2526 = vmatmul.msk.bf16.vlgmr.msrb.gmra.mxu1 %vm1560_vm15, %v2524_v59  ;;  %v2001_v49 = vpop.permute.xlu1 %2000 }
 0x365   : > { %v2010_v62 = vsel %vm1124_vm8, %v1999_v46, %v2001_v49 }
 0x366   : > { %2030 = vmatpush.bf16.msra.mxu3 %v2010_v62 }
 0x367   : > { %v2009_v51 = vpop.permute.xlu0 %2008 }
 0x368   : > { %v2013_v35 = vsel %vm1124_vm8, %v2007_v61, %v2009_v51  ;;  %2055 = vmatpush.bf16.msra.mxu1 %v2009_v51 }
 0x369   : > { %2042 = vmatpush.bf16.msra.mxu0 %v2013_v35 }
 0x36a   : > { %2529 = vmatmul.msk.bf16.vlgmr.msra.gmra.mxu3 %vm1560_vm15, %v2528_v39 }
 0x36c   : > { %v2003_v1 = vpop.permute.xlu1 %2002 }
 0x36d   : > { %2056 = vmatpush.bf16.msra.mxu1 %v2003_v1  ;;  %v2011_v10 = vsel %vm1124_vm8, %v2001_v49, %v2003_v1  ;;  %v2174_v1 = vrot.slane %v3080_v55, 4 }
 0x36e   : > { %2043 = vmatpush.bf16.msra.mxu0 %v2011_v10 }
 0x36f   : > { %v2078_v33 = vpop.permute.xlu0 %2077 }
 0x370   : > { %v2082_v36 = vsel %vm1232_vm9, %v2076_v30, %v2078_v33 }
 0x371   : > { %2111 = vmatpush.bf16.msrb.mxu3 %v2082_v36  ;;  %2530 = vmatmul.msk.bf16.vlgmr.msra.gmra.mxu0 %vm1560_vm15, %v2528_v39 }
 0x372   : > { %2124 = vmatpush.bf16.msrb.mxu0 %v2078_v33  ;;  %v2175_v33 = vsel %vm2160_vm0, %v3075_v48, %v2174_v1 }
 0x373   : > { %2176 = vrot.lane.b32.xlu0 %v2175_v33, %s2635_s15 }
 0x374   : > { %2531 = vmatmul.msk.bf16.vlgmr.msra.gmra.mxu1 %vm1560_vm15, %v2528_v39  ;;  %v2074_v42 = vpop.permute.xlu1 %2073 }
 0x375   : > { %v2081_v7 = vsel %vm1232_vm9, %v2074_v42, %v2076_v30 }
 0x376   : > { %2098 = vmatpush.bf16.msra.mxu2 %v2081_v7 }
 0x377   : > { %v2072_v52 = vpop.permute.xlu0 %2071 }
 0x378   : > { %2125 = vmatpush.bf16.msrb.mxu0 %v2072_v52  ;;  %v2080_v12 = vsel %vm1232_vm9, %v2070_v43, %v2072_v52 }
 0x379   : > { %2112 = vmatpush.bf16.msrb.mxu3 %v2080_v12 }
 0x37c   : > { %2534 = vmatmul.msk.bf16.vlgmr.msrb.gmra.mxu3 %vm1560_vm15, %v2532_v40  ;;  %v2068_v5 = vpop.permute.xlu1 %2067 }
 0x37d   : > { %v2079_v9 = vsel %vm1232_vm9, %v2068_v5, %v2070_v43 }
 0x37e   : > { %2099 = vmatpush.bf16.msra.mxu2 %v2079_v9 }
 0x381   : > { %2533 = vmatmul.msk.bf16.vlgmr.msra.gmra.mxu2 %vm1560_vm15, %v2532_v40  ;;  %2535 = vmatmul.msk.bf16.vlgmr.msrb.gmra.mxu0 %vm1560_vm15, %v2532_v40 }
 0x38c   : > { %v1573_v38 = vpop.f32.mrf.mxu3 }
 0x38d   : > { %v1622_v53 = vadd.f32 %v1621_v18, %v1573_v38 }
 0x394   : > { %v1575_v57 = vpop.f32.mrf.mxu3  ;;  %v1599_v4 = vpop.f32.mrf.mxu0 }
 0x39c   : > { %v1601_v26 = vpop.f32.mrf.mxu0 }
 0x39d   : > { %v1586_v60 = vpop.f32.mrf.mxu3  ;;  %v1700_v27 = vpop.f32.mrf.mxu1 }
 0x39e   : > { %v1635_v25 = vadd.f32 %v1634_v15, %v1586_v60  ;;  %v2138_v26 = vpop.permute.xlu2 %2137 }
 0x3a0   : > { %v1718_v24 = vadd.f32 %v1700_v27, %v1635_v25 }
 0x3a2   : > { %v1713_v29 = vpop.f32.mrf.mxu2 }
 0x3a4   : > { %v1687_v11 = vpop.f32.mrf.mxu0 }
 0x3a5   : > { %v1588_v32 = vpop.f32.mrf.mxu3  ;;  %v1717_v0 = vadd.f32 %v1687_v11, %v1622_v53  ;;  %v1702_v44 = vpop.f32.mrf.mxu1 }
 0x3aa   : > { %v1715_v19 = vpop.f32.mrf.mxu2 }
 0x3ac   : > { %v1689_v20 = vpop.f32.mrf.mxu0 }
 0x3ad   : > { %v1647_v45 = vpop.f32.mrf.mxu3 }
 0x3ae   : > { %v1648_v58 = vadd.f32 %v1647_v45, %v1599_v4 }
 0x3b0   : > { %v1719_v14 = vadd.f32 %v1713_v29, %v1648_v58  ;;  %v2149_v29 = vpop.permute.xlu0 %2148 }
 0x3b5   : > { %v1649_v13 = vpop.f32.mrf.mxu3 }
 0x3bc   : > { %v1782_v41 = vpop.f32.mrf.mxu1 }
 0x3bd   : > { %v1756_v23 = vpop.f32.mrf.mxu3  ;;  %v1769_v47 = vpop.f32.mrf.mxu0  ;;  %v1788_v18 = vadd.f32 %v1782_v41, %v1719_v14 }
 0x3be   : > { %v1787_v7 = vadd.f32 %v1769_v47, %v1718_v24  ;;  %v1786_v9 = vadd.f32 %v1756_v23, %v1717_v0 }
 0x3c4   : > { %v1784_v34 = vpop.f32.mrf.mxu1 }
 0x3c5   : > { %v1758_v21 = vpop.f32.mrf.mxu3  ;;  %v1771_v22 = vpop.f32.mrf.mxu0 }
 0x3c6   : > { %v1825_v2 = vpop.f32.mrf.mxu2 }
 0x3c7   : > { %v1855_v38 = vadd.f32 %v1825_v2, %v1786_v9  ;;  %v2154_v2 = vld [vmem:[%s2705_s21] sm:$0xff] }
 0x3cd   : > { %v1838_v8 = vpop.f32.mrf.mxu3  ;;  %v1851_v28 = vpop.f32.mrf.mxu0 }
 0x3ce   : > { %v1827_v50 = vpop.f32.mrf.mxu2  ;;  %v1857_v52 = vadd.f32 %v1851_v28, %v1788_v18  ;;  %v1856_v12 = vadd.f32 %v1838_v8, %v1787_v7 }
 0x3d1   : > { %v1894_v56 = vpop.f32.mrf.mxu1 }
 0x3d2   : > { %v1924_v48 = vadd.f32 %v1894_v56, %v1855_v38 }
 0x3d5   : > { %v1840_v37 = vpop.f32.mrf.mxu3  ;;  %v1853_v63 = vpop.f32.mrf.mxu0 }
 0x3d6   : > { %v1907_v17 = vpop.f32.mrf.mxu2  ;;  %v2155_v63 = vld [vmem:[%s2705_s21 + $0x8] sm:$0xf]  ;;  %s2313_s21 = sshll.u32 %s3438_s28, 3 }
 0x3d7   : > { %v1925_v6 = vadd.f32 %v1907_v17, %v1856_v12  ;;  %s337_s30 = scalar_lea.vmem %s3434_s8, %s2313_s21 }
 0x3d9   : > { %v1896_v31 = vpop.f32.mrf.mxu1 }
 0x3dd   : > { %v1920_v61 = vpop.f32.mrf.mxu3  ;;  %v1963_v59 = vpop.f32.mrf.mxu0 }
 0x3de   : > { %v1909_v3 = vpop.f32.mrf.mxu2  ;;  %v1926_v40 = vadd.f32 %v1920_v61, %v1857_v52  ;;  %v1993_v27 = vadd.f32 %v1963_v59, %v1924_v48 }
 0x3e1   : > { %v1976_v46 = vpop.f32.mrf.mxu1 }
 0x3e2   : > { %v1994_v15 = vadd.f32 %v1976_v46, %v1925_v6 }
 0x3e5   : > { %v1922_v49 = vpop.f32.mrf.mxu3  ;;  %v1965_v39 = vpop.f32.mrf.mxu0 }
 0x3e6   : > { %v1989_v62 = vpop.f32.mrf.mxu2  ;;  %v2177_v21 = vpop.permute.xlu0 %2176 }
 0x3e7   : > { %v1995_v55 = vadd.f32 %v1989_v62, %v1926_v40  ;;  %v2180_v34 = vrot.slane %v2177_v21, 4 }
 0x3e9   : > { %v1978_v51 = vpop.f32.mrf.mxu1  ;;  %v2181_v28 = vsel %vm1472_vm12, %v2180_v34, %v2177_v21 }
 0x3ed   : > { %v2032_v35 = vpop.f32.mrf.mxu3 }
 0x3ee   : > { %v1991_v30 = vpop.f32.mrf.mxu2  ;;  %v2045_v10 = vpop.f32.mrf.mxu0  ;;  %v2062_v11 = vadd.f32 %v2032_v35, %v1993_v27 }
 0x3ef   : > { %v2063_v53 = vadd.f32 %v2045_v10, %v1994_v15 }
 0x3f1   : > { %v2058_v36 = vpop.f32.mrf.mxu1 }
 0x3f2   : > { %v2064_v16 = vadd.f32 %v2058_v36, %v1995_v55 }
 0x3f5   : > { %v2034_v42 = vpop.f32.mrf.mxu3 }
 0x3f6   : > { %v2047_v43 = vpop.f32.mrf.mxu0 }
 0x3f9   : > { %v2060_v5 = vpop.f32.mrf.mxu1 }
 0x3fe   : > { %v2127_v57 = vpop.f32.mrf.mxu0 }
 0x3ff   : > { %v2114_v4 = vpop.f32.mrf.mxu3  ;;  %v2133_v60 = vadd.f32 %v2127_v57, %v2064_v16 }
 0x400   : > { %v2132_v25 = vadd.f32 %v2114_v4, %v2063_v53 }
 0x401   : > { %v2142_v24 = vadd.f32 %v2138_v26, %v2133_v60 }
 0x402   : > { %v2141_v32 = vadd.f32 %v2138_v26, %v2132_v25 }
 0x403   : > { %v2153_v44 = vadd.f32 %v2149_v29, %v2142_v24 }
 0x404   : > { %v2101_v19 = vpop.f32.mrf.mxu2  ;;  %v2152_v0 = vadd.f32 %v2149_v29, %v2141_v32 }
 0x405   : > { %v2131_v45 = vadd.f32 %v2101_v19, %v2062_v11  ;;  %2164 = vrot.lane.b32.xlu2 %v2153_v44, %s2635_s15 }
 0x406   : > { %v2129_v20 = vpop.f32.mrf.mxu0  ;;  %v2159_v13 = vrot.slane %v2152_v0, 4 }
 0x407   : > { %v2140_v58 = vadd.f32 %v2138_v26, %v2131_v45  ;;  %v2116_v14 = vpop.f32.mrf.mxu3 }
 0x409   : > { %v2151_v23 = vadd.f32 %v2149_v29, %v2140_v58 }
 0x40b   : > { %v2161_v41 = vsel %vm2160_vm0, %v2151_v23, %v2159_v13 }
 0x40c   : > { %2162 = vrot.lane.b32.xlu1 %v2161_v41, %s2635_s15  ;;  %v2103_v47 = vpop.f32.mrf.mxu2 }
 0x414   : > { %2178 = vrot.lane.b32.xlu1 %v3130_v54, %s2635_s15 }
 0x45f   : > { %v2165_v56 = vpop.permute.xlu2 %2164 }
 0x47e   : > { %v2163_v22 = vpop.permute.xlu1 %2162 }
 0x47f   : > { %v2166_v8 = vrot.slane %v2163_v22, 4 }
 0x481   : > { %v2168_v50 = vsel %vm1472_vm12, %v2166_v8, %v2163_v22  ;;  %v2169_v17 = vsel %vm1472_vm12, %v2166_v8, %v2165_v56 }
 0x482   : > { %v2172_v37 = vsub.f32 %v2154_v2, %v2168_v50  ;;  %v2173_v3 = vsub.f32 %v2155_v63, %v2169_v17 }
 0x484   : > { %v2185_v31 = vmul.f32 %v2181_v28, %v2172_v37 }
 0x486   : > { %v2187_v61 = vmul.f32 %v2185_v31, %v2185_v31  ;;  %v2179_v59 = vpop.permute.xlu1 %2178 }
 0x487   : > { %v2182_v54 = vsel %vm1472_vm12, %v2180_v34, %v2179_v59 }
 0x488   : > { %2191 = vst [vmem:[#allocation1] ss:$2 sm:$0xff] %v2187_v61  ;;  %v2186_v46 = vmul.f32 %v2182_v54, %v2173_v3 }
 0x48a   : > { %v2188_v49 = vmul.f32 %v2186_v46, %v2186_v46 }
 0x48c   : > { %2193 = vst [vmem:[#allocation1 + $0x10] ss:$2 sm:$0xff] %v2188_v49 }
 0x48f   : > { %v2195_v62 = vld.sshfl [vmem:[#allocation1 + $0x8] sm:$0xff pattern:$0x75316420]  ;;  %v2194_v39 = vld.sshfl [vmem:[#allocation1] sm:$0xff pattern:$0x75316420] }
 0x490   : > { %2199 = vrot.lane.b32.xlu0 %v2195_v62, %s2629_s25  ;;  %2197 = vrot.lane.b32.xlu2 %v2194_v39, %s2629_s25 }
 0x493   : > { %v2196_v51 = vld.sshfl [vmem:[#allocation1 + $0x10] sm:$0xff pattern:$0x75316420] }
 0x494   : > { %2201 = vrot.lane.b32.xlu1 %v2196_v51, %s2629_s25 }
 0x4ea   : > { %v2198_v1 = vpop.permute.xlu2 %2197 }
 0x502   : > { %v2200_v35 = vpop.permute.xlu0 %2199 }
 0x503   : > { %v2204_v30 = vsel %vm800_vm5, %v2198_v1, %v2200_v35 }
 0x504   : > { %v2209_v36 = vsel %vm2160_vm0, %v2204_v30, 0.0 }
 0x506   : > { %v2202_v10 = vpop.permute.xlu1 %2201 }
 0x507   : > { %v2205_v33 = vsel %vm800_vm5, %v2200_v35, %v2202_v10  ;;  %v2213_v7 = vsel %vm2212_vm1, %v2202_v10, 0.0 }
 0x508   : > { %v2210_v42 = vsel %vm2160_vm0, %v2205_v33, 0.0 }
 0x509   : > { %v2211_v18 = vadd.f32 %v2210_v42, %v2209_v36 }
 0x50b   : > { %v2214_v43 = vadd.f32 %v2213_v7, %v2211_v18 }
 0x50d   : > { %2215 = vadd.xlane.f32.xlu2 %v2214_v43 }
 0x580   : > { %v2216_v52 = vpop.xlane.xlu2 %2215 }
 0x581   : > { %v2217_v12 = vrot.slane %v2216_v52, 4 }
 0x583   : > { %v2218_v40 = vadd.f32 %v2217_v12, %v2216_v52 }
 0x585   : > { %v2219_v5 = vrot.slane %v2218_v40, 2 }
 0x587   : > { %v2220_v6 = vadd.f32 %v2219_v5, %v2218_v40 }
 0x589   : > { %v2221_v9 = vrot.slane %v2220_v6, 1 }
 0x58b   : > { %v2222_v55 = vadd.f32 %v2221_v9, %v2220_v6 }
 0x58d   : > { %2564 = vpush %v2222_v55 }
 0x5be   : > { %s2565_s16 = spop %2564 }
 0x5bf   : > { %v2224_v15 = vstv %s2565_s16 }
 0x5c0   : > { %2226 = vst [vmem:[%s337_s30] sm:$0xff] %v2224_v15 }
 0x5c1 PF: > { %s19_s27 = sadd.s32 1, %s2623_s27  }
 0x5c2   : > { %p16_p7 = scmp.ge.s32.totalorder %s19_s27, 4  }
 0x5c4   :  { %18 = sbr.rel (!%p16_p7) target bundleno = 1 (0x1), region = 110 }
 0x5c9   :  { %2246 = vsyncpa [#allocation4], 1 }
 0x5ca   :  { %2248 = vsyncpa [#allocation4 + $0x1], 1 }

</bundles_post_ra>
